<compile_context>
chip_gen: v6e
topology: v6e:2x2x1
jax: 0.10.0
libtpu: 0.0.40
codegen_flags: <defaults>
</compile_context>

<pallas_src>
import functools

import jax
import jax.numpy as jnp
from jax.experimental import pallas as pl
from jax.experimental.pallas import tpu as pltpu


def _round_up(x, m):
    return (x + m - 1) // m * m


def _decoder_kernel(xf_ref, w1_ref, b1_ref, w2_ref, b2_ref, w3_ref, b3_ref,
                    out_ref, *, unit_size):
    """Masking + 3 FC layers + activations for one batch tile.

    xf_ref : [Bm, Kp]  f32   zero-padded flattened capsule outputs
    w*_ref : bf16 weights stored [in, out]; b*_ref : f32 biases [1, out]
    out_ref: [Bm, Np]  f32   reconstruction (padded output width)
    """
    xf = xf_ref[...]                                       # [Bm, Kp] f32
    bm, kp = xf.shape
    ncp = pl.cdiv(kp, unit_size)                           # padded #classes

    # --- capsule masking (argmax over squared lengths) ----------------------
    sq = xf * xf
    # in-kernel 0/1 selector [Kp, NCp]; padded classes see only zero columns
    row_idx = jax.lax.broadcasted_iota(jnp.int32, (kp, ncp), 0)
    col_cls = jax.lax.broadcasted_iota(jnp.int32, (kp, ncp), 1)
    sel = ((row_idx >= col_cls * unit_size)
           & (row_idx < (col_cls + 1) * unit_size)).astype(jnp.float32)
    len_sq = jnp.dot(sq, sel, preferred_element_type=jnp.float32)  # [Bm, NCp]

    max_v = jnp.max(len_sq, axis=1, keepdims=True)
    cls_iota = jax.lax.broadcasted_iota(jnp.int32, len_sq.shape, 1)
    # first-index tie break, like torch.max
    first_max = jnp.min(jnp.where(len_sq >= max_v, cls_iota, jnp.int32(ncp)),
                        axis=1, keepdims=True)             # [Bm, 1]

    col_idx = jax.lax.broadcasted_iota(jnp.int32, (bm, kp), 1)
    start = first_max * unit_size
    mask_flat = ((col_idx >= start)
                 & (col_idx < start + unit_size)).astype(jnp.float32)
    v = (xf * mask_flat).astype(jnp.bfloat16)              # masked capsules

    # --- 3 fully-connected layers (bf16 operands, f32 accumulation) ---------
    h1 = jnp.dot(v, w1_ref[...], preferred_element_type=jnp.float32) + b1_ref[...]
    h1 = jnp.maximum(h1, 0.0).astype(jnp.bfloat16)         # ReLU (f32) -> bf16
    h2 = jnp.dot(h1, w2_ref[...], preferred_element_type=jnp.float32) + b2_ref[...]
    h2 = jnp.maximum(h2, 0.0).astype(jnp.bfloat16)
    logits = jnp.dot(h2, w3_ref[...], preferred_element_type=jnp.float32) + b3_ref[...]
    # sigmoid: exp on EUP + approximate reciprocal on EUP (frees the VALU slot)
    out_ref[...] = pl.reciprocal(1.0 + jnp.exp(-logits), approx=True)


@functools.partial(jax.jit, static_argnames=("num_classes", "unit_size"))
def decoder_forward(x, target, params, *, num_classes, unit_size):
    """x: [B, num_classes, unit_size] f32, target: [B, num_classes] (unused)."""
    del target  # reference mask() masks by prediction, not by target
    B = x.shape[0]
    in_dim = num_classes * unit_size

    w1, b1, w2, b2, w3, b3 = params
    fc1 = w1.shape[1]
    fc2 = w2.shape[1]
    fc3_out = w3.shape[1]

    # Padded sizes: K to a lane multiple (padding starts on a capsule boundary
    # since in_dim % unit_size == 0), output width to a lane multiple.
    Kp = _round_up(in_dim, 128)
    Np = _round_up(fc3_out, 128)

    # Batch tile: 256 rows fills the v6e/v7x MXU; for tiny batches just round
    # up to a sublane multiple.  Weights stay resident across grid steps.
    block_b = 256 if B >= 256 else _round_up(B, 8)
    B_pad = _round_up(B, block_b)

    x_flat = x.reshape(B, in_dim).astype(jnp.float32)
    x_flat = jnp.pad(x_flat, ((0, B_pad - B), (0, Kp - in_dim)))

    w1p = jnp.pad(w1, ((0, Kp - in_dim), (0, 0))).astype(jnp.bfloat16)
    w2p = w2.astype(jnp.bfloat16)
    w3p = jnp.pad(w3, ((0, 0), (0, Np - fc3_out))).astype(jnp.bfloat16)
    b1p = b1.astype(jnp.float32)
    b2p = b2.astype(jnp.float32)
    b3p = jnp.pad(b3, ((0, 0), (0, Np - fc3_out))).astype(jnp.float32)

    grid = (B_pad // block_b,)
    kernel = functools.partial(_decoder_kernel, unit_size=unit_size)

    cost = pl.CostEstimate(
        flops=2 * B_pad * (Kp * fc1 + fc1 * fc2 + fc2 * Np),
        transcendentals=B_pad * Np,
        bytes_accessed=(B_pad * Kp * 4 + B_pad * Np * 4
                        + (w1p.size + w2p.size + w3p.size) * 2
                        + (b1p.size + b2p.size + b3p.size) * 4),
    )

    out = pl.pallas_call(
        kernel,
        out_shape=jax.ShapeDtypeStruct((B_pad, Np), jnp.float32),
        grid_spec=pltpu.PrefetchScalarGridSpec(
            num_scalar_prefetch=0,
            grid=grid,
            in_specs=[
                pl.BlockSpec((block_b, Kp), lambda i: (i, 0)),   # x tile (pipelined)
                pl.BlockSpec((Kp, fc1), lambda i: (0, 0)),       # weights: VMEM-resident
                pl.BlockSpec((1, fc1), lambda i: (0, 0)),
                pl.BlockSpec((fc1, fc2), lambda i: (0, 0)),
                pl.BlockSpec((1, fc2), lambda i: (0, 0)),
                pl.BlockSpec((fc2, Np), lambda i: (0, 0)),
                pl.BlockSpec((1, Np), lambda i: (0, 0)),
            ],
            out_specs=pl.BlockSpec((block_b, Np), lambda i: (i, 0)),
        ),
        compiler_params=pltpu.CompilerParams(
            dimension_semantics=("parallel",)),   # megacore sharding on v7x
        cost_estimate=cost,
    )(x_flat, w1p, b1p, w2p, b2p, w3p, b3p)

    return out[:B, :fc3_out]


def init_decoder_params(key, num_classes, unit_size, input_width, input_height,
                        num_conv_in_channel):
    """nn.Linear-style U(-1/sqrt(fan_in), +1/sqrt(fan_in)) init.

    Weights stored as [in, out] (transposed vs torch) so the kernel does x @ W;
    biases stored as [1, out] for clean 2-D broadcasting.
    """
    in_dim = num_classes * unit_size
    fc1, fc2 = 512, 1024
    fc3 = input_width * input_height * num_conv_in_channel

    def linear(k, fan_in, fan_out):
        kw, kb = jax.random.split(k)
        bound = 1.0 / jnp.sqrt(jnp.float32(fan_in))
        w = jax.random.uniform(kw, (fan_in, fan_out), jnp.float32, -bound, bound)
        b = jax.random.uniform(kb, (1, fan_out), jnp.float32, -bound, bound)
        return w, b

    k1, k2, k3 = jax.random.split(key, 3)
    w1, b1 = linear(k1, in_dim, fc1)
    w2, b2 = linear(k2, fc1, fc2)
    w3, b3 = linear(k3, fc2, fc3)
    return (w1, b1, w2, b2, w3, b3)


def _reference_forward(x, params, num_classes, unit_size):
    """Pure-JAX f32 reference for correctness check."""
    w1, b1, w2, b2, w3, b3 = params
    B = x.shape[0]
    lengths = jnp.sqrt(jnp.sum(x * x, axis=2))
    idx = jnp.argmax(lengths, axis=1)
    mask = jax.nn.one_hot(idx, num_classes, dtype=x.dtype)[:, :, None]
    v = (x * mask).reshape(B, num_classes * unit_size)
    h1 = jax.nn.relu(v @ w1 + b1)
    h2 = jax.nn.relu(h1 @ w2 + b2)
    return jax.nn.sigmoid(h2 @ w3 + b3)


if __name__ == "__main__":
    # Small, module-consistent shapes: 10 classes x 16-dim capsules,
    # 16x16x1 reconstructed image (fc3_output_size = 256).
    B = 4
    NUM_CLASSES = 10
    UNIT_SIZE = 16
    W = H = 16
    C = 1

    key = jax.random.PRNGKey(0)
    kx, kt, kp = jax.random.split(key, 3)
    x = jax.random.normal(kx, (B, NUM_CLASSES, UNIT_SIZE), jnp.float32)
    target = jax.nn.one_hot(
        jax.random.randint(kt, (B,), 0, NUM_CLASSES), NUM_CLASSES,
        dtype=jnp.float32)

    params = init_decoder_params(kp, NUM_CLASSES, UNIT_SIZE, W, H, C)

    out = decoder_forward(x, target, params,
                          num_classes=NUM_CLASSES, unit_size=UNIT_SIZE)
    out = jax.block_until_ready(out)

    ref = _reference_forward(x, params, NUM_CLASSES, UNIT_SIZE)
    assert out.shape == (B, W * H * C), out.shape
    # bf16 matmul operands + approx reciprocal -> compare with a loose tolerance
    assert jnp.max(jnp.abs(out - ref)) < 2e-2, "mismatch vs f32 reference"

    print("KERNEL_OK")
</pallas_src>

<mosaic_0001>
module attributes {stable_mosaic.version = 11 : i64} {
  func.func @_decoder_kernel(%arg0: i32, %arg1: memref<8x256xf32, #tpu.memory_space<vmem>>, %arg2: memref<256x512xbf16, #tpu.memory_space<vmem>>, %arg3: memref<1x512xf32, #tpu.memory_space<vmem>>, %arg4: memref<512x1024xbf16, #tpu.memory_space<vmem>>, %arg5: memref<1x1024xf32, #tpu.memory_space<vmem>>, %arg6: memref<1024x256xbf16, #tpu.memory_space<vmem>>, %arg7: memref<1x256xf32, #tpu.memory_space<vmem>>, %arg8: memref<8x256xf32, #tpu.memory_space<vmem>>) attributes {dimension_semantics = [#tpu.dimension_semantics<parallel>], iteration_bounds = array<i64: 1>, scalar_prefetch = 0 : i64, scratch_operands = 0 : i64, tpu.core_type = #tpu.core_type<tc>, window_params = [{transform_indices = @transform_0, window_bounds = array<i64: 8, 256>}, {pipeline_mode = #tpu.pipeline_mode<synchronous>, transform_indices = @transform_1, window_bounds = array<i64: 256, 512>}, {pipeline_mode = #tpu.pipeline_mode<synchronous>, transform_indices = @transform_2, window_bounds = array<i64: 1, 512>}, {pipeline_mode = #tpu.pipeline_mode<synchronous>, transform_indices = @transform_3, window_bounds = array<i64: 512, 1024>}, {pipeline_mode = #tpu.pipeline_mode<synchronous>, transform_indices = @transform_4, window_bounds = array<i64: 1, 1024>}, {pipeline_mode = #tpu.pipeline_mode<synchronous>, transform_indices = @transform_5, window_bounds = array<i64: 1024, 256>}, {pipeline_mode = #tpu.pipeline_mode<synchronous>, transform_indices = @transform_6, window_bounds = array<i64: 1, 256>}, {transform_indices = @transform_7, window_bounds = array<i64: 8, 256>}]} {
    %c0 = arith.constant 0 : index
    %c0_0 = arith.constant 0 : index
    %0 = vector.load %arg1[%c0, %c0_0] : memref<8x256xf32, #tpu.memory_space<vmem>>, vector<8x256xf32>
    %1 = arith.mulf %0, %0 : vector<8x256xf32>
    %2 = tpu.iota {dimensions = array<i32: 0>} : vector<256x16xi32>
    %3 = tpu.iota {dimensions = array<i32: 1>} : vector<256x16xi32>
    %c16_i32 = arith.constant 16 : i32
    %4 = vector.broadcast %c16_i32 : i32 to vector<256x16xi32>
    %5 = arith.muli %3, %4 : vector<256x16xi32>
    %6 = arith.cmpi sge, %2, %5 : vector<256x16xi32>
    %c1_i32 = arith.constant 1 : i32
    %7 = vector.broadcast %c1_i32 : i32 to vector<256x16xi32>
    %8 = arith.addi %3, %7 : vector<256x16xi32>
    %c16_i32_1 = arith.constant 16 : i32
    %9 = vector.broadcast %c16_i32_1 : i32 to vector<256x16xi32>
    %10 = arith.muli %8, %9 : vector<256x16xi32>
    %11 = arith.cmpi slt, %2, %10 : vector<256x16xi32>
    %12 = arith.andi %6, %11 : vector<256x16xi1>
    %13 = arith.extui %12 : vector<256x16xi1> to vector<256x16xi32>
    %14 = arith.sitofp %13 : vector<256x16xi32> to vector<256x16xf32>
    %cst = arith.constant dense<0.000000e+00> : vector<8x16xf32>
    %15 = tpu.matmul %1, %14, %cst {dimension_numbers = #tpu.dot_dimension_numbers<[1], [0], [0], [1], [0, 0, 1, 1], [], []>} : vector<8x256xf32>, vector<256x16xf32>, vector<8x16xf32> -> vector<8x16xf32>
    %cst_2 = arith.constant dense<0xFF800000> : vector<8xf32>
    %16 = vector.multi_reduction <maximumf>, %15, %cst_2 [1] : vector<8x16xf32> to vector<8xf32>
    %17 = vector.shape_cast %16 : vector<8xf32> to vector<8x1xf32>
    %18 = tpu.iota {dimensions = array<i32: 1>} : vector<8x16xi32>
    %19 = vector.broadcast %17 : vector<8x1xf32> to vector<8x16xf32>
    %20 = arith.cmpf oge, %15, %19 : vector<8x16xf32>
    %c16_i32_3 = arith.constant 16 : i32
    %21 = vector.broadcast %c16_i32_3 : i32 to vector<8x16xi32>
    %22 = arith.select %20, %18, %21 : vector<8x16xi1>, vector<8x16xi32>
    %cst_4 = arith.constant dense<2147483647> : vector<8xi32>
    %23 = vector.multi_reduction <minsi>, %22, %cst_4 [1] : vector<8x16xi32> to vector<8xi32>
    %24 = vector.shape_cast %23 : vector<8xi32> to vector<8x1xi32>
    %25 = tpu.iota {dimensions = array<i32: 1>} : vector<8x256xi32>
    %c16_i32_5 = arith.constant 16 : i32
    %26 = vector.broadcast %c16_i32_5 : i32 to vector<8x1xi32>
    %27 = arith.muli %24, %26 : vector<8x1xi32>
    %28 = vector.broadcast %27 : vector<8x1xi32> to vector<8x256xi32>
    %29 = arith.cmpi sge, %25, %28 : vector<8x256xi32>
    %c16_i32_6 = arith.constant 16 : i32
    %30 = vector.broadcast %c16_i32_6 : i32 to vector<8x1xi32>
    %31 = arith.addi %27, %30 : vector<8x1xi32>
    %32 = vector.broadcast %31 : vector<8x1xi32> to vector<8x256xi32>
    %33 = arith.cmpi slt, %25, %32 : vector<8x256xi32>
    %34 = arith.andi %29, %33 : vector<8x256xi1>
    %35 = arith.extui %34 : vector<8x256xi1> to vector<8x256xi32>
    %36 = arith.sitofp %35 : vector<8x256xi32> to vector<8x256xf32>
    %37 = arith.mulf %0, %36 : vector<8x256xf32>
    %38 = arith.truncf %37 : vector<8x256xf32> to vector<8x256xbf16>
    %c0_7 = arith.constant 0 : index
    %c0_8 = arith.constant 0 : index
    %39 = vector.load %arg2[%c0_7, %c0_8] : memref<256x512xbf16, #tpu.memory_space<vmem>>, vector<256x512xbf16>
    %cst_9 = arith.constant dense<0.000000e+00> : vector<8x512xf32>
    %40 = tpu.matmul %38, %39, %cst_9 {dimension_numbers = #tpu.dot_dimension_numbers<[1], [0], [0], [1], [0, 0, 1, 1], [], []>} : vector<8x256xbf16>, vector<256x512xbf16>, vector<8x512xf32> -> vector<8x512xf32>
    %c0_10 = arith.constant 0 : index
    %c0_11 = arith.constant 0 : index
    %41 = vector.load %arg3[%c0_10, %c0_11] : memref<1x512xf32, #tpu.memory_space<vmem>>, vector<1x512xf32>
    %42 = vector.broadcast %41 : vector<1x512xf32> to vector<8x512xf32>
    %43 = arith.addf %40, %42 : vector<8x512xf32>
    %cst_12 = arith.constant 0.000000e+00 : f32
    %44 = vector.broadcast %cst_12 : f32 to vector<8x512xf32>
    %45 = arith.maximumf %43, %44 : vector<8x512xf32>
    %46 = arith.truncf %45 : vector<8x512xf32> to vector<8x512xbf16>
    %c0_13 = arith.constant 0 : index
    %c0_14 = arith.constant 0 : index
    %47 = vector.load %arg4[%c0_13, %c0_14] : memref<512x1024xbf16, #tpu.memory_space<vmem>>, vector<512x1024xbf16>
    %cst_15 = arith.constant dense<0.000000e+00> : vector<8x1024xf32>
    %48 = tpu.matmul %46, %47, %cst_15 {dimension_numbers = #tpu.dot_dimension_numbers<[1], [0], [0], [1], [0, 0, 1, 1], [], []>} : vector<8x512xbf16>, vector<512x1024xbf16>, vector<8x1024xf32> -> vector<8x1024xf32>
    %c0_16 = arith.constant 0 : index
    %c0_17 = arith.constant 0 : index
    %49 = vector.load %arg5[%c0_16, %c0_17] : memref<1x1024xf32, #tpu.memory_space<vmem>>, vector<1x1024xf32>
    %50 = vector.broadcast %49 : vector<1x1024xf32> to vector<8x1024xf32>
    %51 = arith.addf %48, %50 : vector<8x1024xf32>
    %cst_18 = arith.constant 0.000000e+00 : f32
    %52 = vector.broadcast %cst_18 : f32 to vector<8x1024xf32>
    %53 = arith.maximumf %51, %52 : vector<8x1024xf32>
    %54 = arith.truncf %53 : vector<8x1024xf32> to vector<8x1024xbf16>
    %c0_19 = arith.constant 0 : index
    %c0_20 = arith.constant 0 : index
    %55 = vector.load %arg6[%c0_19, %c0_20] : memref<1024x256xbf16, #tpu.memory_space<vmem>>, vector<1024x256xbf16>
    %cst_21 = arith.constant dense<0.000000e+00> : vector<8x256xf32>
    %56 = tpu.matmul %54, %55, %cst_21 {dimension_numbers = #tpu.dot_dimension_numbers<[1], [0], [0], [1], [0, 0, 1, 1], [], []>} : vector<8x1024xbf16>, vector<1024x256xbf16>, vector<8x256xf32> -> vector<8x256xf32>
    %c0_22 = arith.constant 0 : index
    %c0_23 = arith.constant 0 : index
    %57 = vector.load %arg7[%c0_22, %c0_23] : memref<1x256xf32, #tpu.memory_space<vmem>>, vector<1x256xf32>
    %58 = vector.broadcast %57 : vector<1x256xf32> to vector<8x256xf32>
    %59 = arith.addf %56, %58 : vector<8x256xf32>
    %cst_24 = arith.constant 0.000000e+00 : f32
    %60 = vector.broadcast %cst_24 : f32 to vector<8x256xf32>
    %61 = arith.subf %60, %59 : vector<8x256xf32>
    %62 = math.exp %61 : vector<8x256xf32>
    %cst_25 = arith.constant 1.000000e+00 : f32
    %63 = vector.broadcast %cst_25 : f32 to vector<8x256xf32>
    %64 = arith.addf %63, %62 : vector<8x256xf32>
    %65 = tpu.reciprocal %64 {approx = true} : vector<8x256xf32> -> vector<8x256xf32>
    %c0_26 = arith.constant 0 : index
    %c0_27 = arith.constant 0 : index
    %66 = vector.load %arg8[%c0_26, %c0_27] : memref<8x256xf32, #tpu.memory_space<vmem>>, vector<8x256xf32>
    tpu.vector_store %arg8[%c0_26, %c0_27], %65 {strides = array<i32>} : memref<8x256xf32, #tpu.memory_space<vmem>>, vector<8x256xf32>,
    return
  }
  func.func @transform_0(%arg0: i32) -> (i32, i32) {
    %c0_i32 = arith.constant 0 : i32
    %c0_i32_0 = arith.constant 0 : i32
    return %arg0, %c0_i32 : i32, i32
  }
  func.func @transform_1(%arg0: i32) -> (i32, i32) {
    %c0_i32 = arith.constant 0 : i32
    %c0_i32_0 = arith.constant 0 : i32
    %c0_i32_1 = arith.constant 0 : i32
    return %c0_i32, %c0_i32_0 : i32, i32
  }
  func.func @transform_2(%arg0: i32) -> (i32, i32) {
    %c0_i32 = arith.constant 0 : i32
    %c0_i32_0 = arith.constant 0 : i32
    %c0_i32_1 = arith.constant 0 : i32
    return %c0_i32, %c0_i32_0 : i32, i32
  }
  func.func @transform_3(%arg0: i32) -> (i32, i32) {
    %c0_i32 = arith.constant 0 : i32
    %c0_i32_0 = arith.constant 0 : i32
    %c0_i32_1 = arith.constant 0 : i32
    return %c0_i32, %c0_i32_0 : i32, i32
  }
  func.func @transform_4(%arg0: i32) -> (i32, i32) {
    %c0_i32 = arith.constant 0 : i32
    %c0_i32_0 = arith.constant 0 : i32
    %c0_i32_1 = arith.constant 0 : i32
    return %c0_i32, %c0_i32_0 : i32, i32
  }
  func.func @transform_5(%arg0: i32) -> (i32, i32) {
    %c0_i32 = arith.constant 0 : i32
    %c0_i32_0 = arith.constant 0 : i32
    %c0_i32_1 = arith.constant 0 : i32
    return %c0_i32, %c0_i32_0 : i32, i32
  }
  func.func @transform_6(%arg0: i32) -> (i32, i32) {
    %c0_i32 = arith.constant 0 : i32
    %c0_i32_0 = arith.constant 0 : i32
    %c0_i32_1 = arith.constant 0 : i32
    return %c0_i32, %c0_i32_0 : i32, i32
  }
  func.func @transform_7(%arg0: i32) -> (i32, i32) {
    %c0_i32 = arith.constant 0 : i32
    %c0_i32_0 = arith.constant 0 : i32
    return %arg0, %c0_i32 : i32, i32
  }
}

</mosaic_0001>

<bundles_post_ra>
// kernel: decoder_forward.1
= control target key start
LH: loop header
LB: loop body
LE: loop exit
PB: predicated region body
PF: predicated region fallthrough
CT: control target
= control target key end

     0   :  { %v30_v0 = vlaneseq  ;;  %v4561_v15 = vmov 1.0   ;;  %s6199_s0 = inlined_call_operand.vmem [shape: f32[8,256], index: 0, kind: input, shape index: {}]   ;;  %s6200_s1 = inlined_call_operand.vmem [shape: bf16[256,512], index: 1, kind: input, shape index: {}]   ;;  %s6201_s3 = inlined_call_operand.vmem [shape: bf16[512,1024], index: 3, kind: input, shape index: {}]   ;;  %s6202_s2 = inlined_call_operand.vmem [shape: f32[1,512], index: 2, kind: input, shape index: {}]   ;;  %s6203_s5 = inlined_call_operand.vmem [shape: bf16[1024,256], index: 5, kind: input, shape index: {}]   ;;  %s6204_s4 = inlined_call_operand.vmem [shape: f32[1,1024], index: 4, kind: input, shape index: {}]   ;;  %s6205_s6 = inlined_call_operand.vmem [shape: f32[1,256], index: 6, kind: input, shape index: {}]   ;;  %s6206_s7 = inlined_call_operand.vmem [shape: f32[8,256], index: 7, kind: output, shape index: {}]  }
   0x1   :  { %v4606_v1 = vld [vmem:[%s6199_s0 + $0x8] sm:$0xff]  ;;  %v4744_v40 = vld [vmem:[%s6199_s0] sm:$0xff] }
   0x2   :  { %v4608_v2 = vshrl.u32 %v30_v0, 7  ;;  %v4610_v3 = vand.u32 127, %v30_v0  ;;  %v29_v4 = vmul.f32 %v4606_v1, %v4606_v1  ;;  %v28_v41 = vmul.f32 %v4744_v40, %v4744_v40  ;;  %v4265_v51 = vld [vmem:[%s6200_s1 + $0xe4] ss:$16 sps:$4 sm:$0xff]   ;;  %v4267_v52 = vld [vmem:[%s6200_s1 + $0xe8] ss:$16 sps:$4 sm:$0xff]  }
   0x3   :  { %742 = vmatprep.subr.bf16.mxu1 %v4265_v51  ;;  %v4269_v53 = vld [vmem:[%s6200_s1 + $0xec] ss:$16 sps:$4 sm:$0xff]   ;;  %v4270_v54 = vld [vmem:[%s6200_s1 + $0xe0] ss:$16 sps:$4 sm:$0xff]   ;;  %v4271_v55 = vld [vmem:[%s6200_s1 + $0xc4] ss:$16 sps:$4 sm:$0xff]  }
   0x4   :  { %v62_v5 = vadd.s32 248, %v4608_v2  ;;  %v4616_v6 = vmul.u32 16, %v4610_v3  ;;  %v98_v7 = vadd.s32 1, %v4610_v3  ;;  %v46_v8 = vadd.s32 120, %v4608_v2  ;;  %292 = vmatprep.mubr.f32.mxu0 %v29_v4  ;;  %743 = vmatpush1.bf16.msra.mxu1 %v4270_v54  ;;  %v4273_v56 = vld [vmem:[%s6200_s1 + $0xc8] ss:$16 sps:$4 sm:$0xff]  }
   0x5   :  { %v61_v9 = vadd.s32 240, %v4608_v2  ;;  %v45_v10 = vadd.s32 112, %v4608_v2  ;;  %v60_v12 = vadd.s32 232, %v4608_v2  ;;  %v44_v13 = vadd.s32 104, %v4608_v2  ;;  %v4275_v57 = vld [vmem:[%s6200_s1 + $0xcc] ss:$16 sps:$4 sm:$0xff]   ;;  %744 = vmatprep.subr.bf16.mxu1 %v4271_v55 }
   0x6   :  { %vm97_vm0 = vcmp.ge.s32.totalorder %v62_v5, %v4616_v6  ;;  %v4623_v11 = vmul.u32 16, %v98_v7  ;;  %vm81_vm1 = vcmp.ge.s32.totalorder %v46_v8, %v4616_v6  ;;  %v59_v14 = vadd.s32 224, %v4608_v2  ;;  %v4276_v58 = vld [vmem:[%s6200_s1 + $0xc0] ss:$16 sps:$4 sm:$0xff]   ;;  %v4277_v59 = vld [vmem:[%s6200_s1 + $0xa4] ss:$16 sps:$4 sm:$0xff]  }
   0x7   :  { %vm96_vm4 = vcmp.ge.s32.totalorder %v61_v9, %v4616_v6  ;;  %vm80_vm7 = vcmp.ge.s32.totalorder %v45_v10, %v4616_v6  ;;  %vm95_vm10 = vcmp.ge.s32.totalorder %v60_v12, %v4616_v6  ;;  %v43_v16 = vadd.s32 96, %v4608_v2  ;;  %v4279_v60 = vld [vmem:[%s6200_s1 + $0xa8] ss:$16 sps:$4 sm:$0xff]   ;;  %v4281_v61 = vld [vmem:[%s6200_s1 + $0xac] ss:$16 sps:$4 sm:$0xff]  }
   0x8   :  { %vm131_vm2 = vcmp.lt.s32.totalorder %v62_v5, %v4623_v11  ;;  %vm115_vm3 = vcmp.lt.s32.totalorder %v46_v8, %v4623_v11  ;;  %vm130_vm5 = vcmp.lt.s32.totalorder %v61_v9, %v4623_v11  ;;  %vm114_vm8 = vcmp.lt.s32.totalorder %v45_v10, %v4623_v11  ;;  %745 = vmatpush1.bf16.msra.mxu1 %v4276_v58  ;;  %v4282_v62 = vld [vmem:[%s6200_s1 + $0xa0] ss:$16 sps:$4 sm:$0xff]   ;;  %v4283_v63 = vld [vmem:[%s6200_s1 + $0x84] ss:$16 sps:$4 sm:$0xff]   ;;  %v4287_v0 = vld [vmem:[%s6200_s1 + $0x8c] ss:$16 sps:$4 sm:$0xff]  }
   0x9   :  { %vm163_vm6 = vmand %vm97_vm0, %vm131_vm2  ;;  %vm129_vm11 = vcmp.lt.s32.totalorder %v60_v12, %v4623_v11  ;;  %v58_v17 = vadd.s32 216, %v4608_v2  ;;  %vm79_vm13 = vcmp.ge.s32.totalorder %v44_v13, %v4616_v6  ;;  %vm113_vm14 = vcmp.lt.s32.totalorder %v44_v13, %v4623_v11  ;;  %746 = vmatprep.subr.bf16.mxu1 %v4277_v59  ;;  %v4285_v4 = vld [vmem:[%s6200_s1 + $0x88] ss:$16 sps:$4 sm:$0xff]   ;;  %v4288_v5 = vld [vmem:[%s6200_s1 + $0x80] ss:$16 sps:$4 sm:$0xff]  }
   0xa   :  { %4228 = vmatprep.subr.msk.mxu0 %vm163_vm6, %v4561_v15  ;;  %vm147_vm9 = vmand %vm81_vm1, %vm115_vm3  ;;  %v42_v18 = vadd.s32 88, %v4608_v2  ;;  %vm94_vm0 = vcmp.ge.s32.totalorder %v59_v14, %v4616_v6  ;;  %vm128_vm1 = vcmp.lt.s32.totalorder %v59_v14, %v4623_v11  ;;  %v57_v19 = vadd.s32 208, %v4608_v2  ;;  %v4293_v7 = vld [vmem:[%s6200_s1 + $0x6c] ss:$16 sps:$4 sm:$0xff]   ;;  %v4291_v8 = vld [vmem:[%s6200_s1 + $0x68] ss:$16 sps:$4 sm:$0xff]  }
   0xb   :  { %4229 = vmatpush3.msk.msra.mxu0 %vm147_vm9, %v4561_v15  ;;  %vm162_vm12 = vmand %vm96_vm4, %vm130_vm5  ;;  %vm78_vm3 = vcmp.ge.s32.totalorder %v43_v16, %v4616_v6  ;;  %vm112_vm4 = vcmp.lt.s32.totalorder %v43_v16, %v4623_v11  ;;  %v41_v20 = vadd.s32 80, %v4608_v2  ;;  %vm93_vm6 = vcmp.ge.s32.totalorder %v58_v17, %v4616_v6  ;;  %v4294_v9 = vld [vmem:[%s6200_s1 + $0x60] ss:$16 sps:$4 sm:$0xff]   ;;  %v4295_v10 = vld [vmem:[%s6200_s1 + $0x44] ss:$16 sps:$4 sm:$0xff]  }
   0xc   :  { %4230 = vmatprep.subr.msk.mxu0 %vm162_vm12, %v4561_v15  ;;  %vm146_vm15 = vmand %vm80_vm7, %vm114_vm8  ;;  %vm127_vm7 = vcmp.lt.s32.totalorder %v58_v17, %v4623_v11  ;;  %v56_v21 = vadd.s32 200, %v4608_v2  ;;  %vm77_vm9 = vcmp.ge.s32.totalorder %v42_v18, %v4616_v6  ;;  %v40_v22 = vadd.s32 72, %v4608_v2  ;;  %747 = vmatpush1.bf16.msra.mxu1 %v4282_v62  ;;  %v4297_v12 = vld [vmem:[%s6200_s1 + $0x48] ss:$16 sps:$4 sm:$0xff]   ;;  %v4300_v13 = vld [vmem:[%s6200_s1 + $0x40] ss:$16 sps:$4 sm:$0xff]  }
   0xd   :  { %4231 = vmatpush3.msk.msra.mxu0 %vm146_vm15, %v4561_v15  ;;  %vm161_vm2 = vmand %vm95_vm10, %vm129_vm11  ;;  %vm111_vm10 = vcmp.lt.s32.totalorder %v42_v18, %v4623_v11  ;;  %vm92_vm12 = vcmp.ge.s32.totalorder %v57_v19, %v4616_v6  ;;  %v55_v23 = vadd.s32 192, %v4608_v2  ;;  %vm76_vm15 = vcmp.ge.s32.totalorder %v41_v20, %v4616_v6  ;;  %748 = vmatprep.subr.bf16.mxu1 %v4283_v63  ;;  %v4301_v14 = vld [vmem:[%s6200_s1 + $0x24] ss:$16 sps:$4 sm:$0xff]   ;;  %v4303_v16 = vld [vmem:[%s6200_s1 + $0x28] ss:$16 sps:$4 sm:$0xff]  }
   0xe   :  { %4232 = vmatprep.subr.msk.mxu0 %vm161_vm2, %v4561_v15  ;;  %vm145_vm5 = vmand %vm79_vm13, %vm113_vm14  ;;  %vm126_vm13 = vcmp.lt.s32.totalorder %v57_v19, %v4623_v11  ;;  %v39_v24 = vadd.s32 64, %v4608_v2  ;;  %vm91_vm2 = vcmp.ge.s32.totalorder %v56_v21, %v4616_v6  ;;  %v54_v25 = vadd.s32 184, %v4608_v2  ;;  %v4306_v17 = vld [vmem:[%s6200_s1 + $0x20] ss:$16 sps:$4 sm:$0xff]   ;;  %v4307_v18 = vld [vmem:[%s6200_s1 + $0x4] ss:$16 sps:$4 sm:$0xff]  }
   0xf   :  { %4233 = vmatpush3.msk.msra.mxu0 %vm145_vm5, %v4561_v15  ;;  %vm160_vm8 = vmand %vm94_vm0, %vm128_vm1  ;;  %vm110_vm0 = vcmp.lt.s32.totalorder %v41_v20, %v4623_v11  ;;  %vm75_vm5 = vcmp.ge.s32.totalorder %v40_v22, %v4616_v6  ;;  %v38_v26 = vadd.s32 56, %v4608_v2  ;;  %v53_v27 = vadd.s32 176, %v4608_v2  ;;  %v4311_v19 = vld [vmem:[%s6200_s1 + $0xc] ss:$16 sps:$4 sm:$0xff]   ;;  %v4309_v20 = vld [vmem:[%s6200_s1 + $0x8] ss:$16 sps:$4 sm:$0xff]  }
  0x10   :  { %4234 = vmatprep.subr.msk.mxu0 %vm160_vm8, %v4561_v15  ;;  %vm144_vm11 = vmand %vm78_vm3, %vm112_vm4  ;;  %vm125_vm3 = vcmp.lt.s32.totalorder %v56_v21, %v4623_v11  ;;  %vm90_vm8 = vcmp.ge.s32.totalorder %v55_v23, %v4616_v6  ;;  %v37_v28 = vadd.s32 48, %v4608_v2  ;;  %v52_v29 = vadd.s32 168, %v4608_v2  ;;  %749 = vmatpush1.bf16.msra.mxu1 %v4288_v5  ;;  %v4312_v21 = vld [vmem:[%s6200_s1] ss:$16 sps:$4 sm:$0xff]   ;;  %v4349_v51 = vld [vmem:[%s6200_s1 + $0x124] ss:$16 sps:$4 sm:$0xff]  }
  0x11   :  { %4235 = vmatpush3.msk.msra.mxu0 %vm144_vm11, %v4561_v15  ;;  %vm159_vm14 = vmand %vm93_vm6, %vm127_vm7  ;;  %vm109_vm6 = vcmp.lt.s32.totalorder %v40_v22, %v4623_v11  ;;  %vm74_vm11 = vcmp.ge.s32.totalorder %v39_v24, %v4616_v6  ;;  %v36_v30 = vadd.s32 40, %v4608_v2  ;;  %v51_v31 = vadd.s32 160, %v4608_v2  ;;  %v4313_v22 = vld [vmem:[%s6200_s1 + $0x1e4] ss:$16 sps:$4 sm:$0xff]   ;;  %v4354_v54 = vld [vmem:[%s6200_s1 + $0x120] ss:$16 sps:$4 sm:$0xff]  }
  0x12   :  { %4236 = vmatprep.subr.msk.mxu0 %vm159_vm14, %v4561_v15  ;;  %vm143_vm1 = vmand %vm77_vm9, %vm111_vm10  ;;  %vm124_vm9 = vcmp.lt.s32.totalorder %v55_v23, %v4623_v11  ;;  %vm89_vm14 = vcmp.ge.s32.totalorder %v54_v25, %v4616_v6  ;;  %v35_v32 = vadd.s32 32, %v4608_v2  ;;  %v50_v33 = vadd.s32 152, %v4608_v2  ;;  %v4317_v23 = vld [vmem:[%s6200_s1 + $0x1ec] ss:$16 sps:$4 sm:$0xff]   ;;  %v4355_v55 = vld [vmem:[%s6200_s1 + $0x104] ss:$16 sps:$4 sm:$0xff]  }
  0x13   :  { %4237 = vmatpush3.msk.msra.mxu0 %vm143_vm1, %v4561_v15  ;;  %vm158_vm4 = vmand %vm92_vm12, %vm126_vm13  ;;  %vm108_vm12 = vcmp.lt.s32.totalorder %v39_v24, %v4623_v11  ;;  %vm73_vm1 = vcmp.ge.s32.totalorder %v38_v26, %v4616_v6  ;;  %v34_v34 = vadd.s32 24, %v4608_v2  ;;  %v49_v35 = vadd.s32 144, %v4608_v2  ;;  %v4315_v24 = vld [vmem:[%s6200_s1 + $0x1e8] ss:$16 sps:$4 sm:$0xff]   ;;  %v4360_v58 = vld [vmem:[%s6200_s1 + $0x100] ss:$16 sps:$4 sm:$0xff]  }
  0x14   :  { %4238 = vmatprep.subr.msk.mxu0 %vm158_vm4, %v4561_v15  ;;  %vm142_vm7 = vmand %vm76_vm15, %vm110_vm0  ;;  %vm123_vm15 = vcmp.lt.s32.totalorder %v54_v25, %v4623_v11  ;;  %vm88_vm4 = vcmp.ge.s32.totalorder %v53_v27, %v4616_v6  ;;  %v33_v36 = vadd.s32 16, %v4608_v2  ;;  %v48_v37 = vadd.s32 136, %v4608_v2  ;;  %v4318_v25 = vld [vmem:[%s6200_s1 + $0x1e0] ss:$16 sps:$4 sm:$0xff]  }
  0x15   :  { %4239 = vmatpush3.msk.msra.mxu0 %vm142_vm7, %v4561_v15  ;;  %vm157_vm10 = vmand %vm91_vm2, %vm125_vm3  ;;  %vm107_vm2 = vcmp.lt.s32.totalorder %v38_v26, %v4623_v11  ;;  %vm72_vm7 = vcmp.ge.s32.totalorder %v37_v28, %v4616_v6  ;;  %v32_v38 = vadd.s32 8, %v4608_v2  ;;  %v47_v39 = vadd.s32 128, %v4608_v2  ;;  %v4319_v26 = vld [vmem:[%s6200_s1 + $0x1c4] ss:$16 sps:$4 sm:$0xff]  }
  0x16   :  { %4240 = vmatprep.subr.msk.mxu0 %vm157_vm10, %v4561_v15  ;;  %vm141_vm13 = vmand %vm75_vm5, %vm109_vm6  ;;  %vm122_vm5 = vcmp.lt.s32.totalorder %v53_v27, %v4623_v11  ;;  %vm87_vm10 = vcmp.ge.s32.totalorder %v52_v29, %v4616_v6  ;;  %v4323_v27 = vld [vmem:[%s6200_s1 + $0x1cc] ss:$16 sps:$4 sm:$0xff]   ;;  %v888_v59 = vld [vmem:[%s6201_s3 + $0x1c0] sm:$0xff] }
  0x17   :  { %4241 = vmatpush3.msk.msra.mxu0 %vm141_vm13, %v4561_v15  ;;  %vm156_vm0 = vmand %vm90_vm8, %vm124_vm9  ;;  %vm106_vm8 = vcmp.lt.s32.totalorder %v37_v28, %v4623_v11  ;;  %vm71_vm13 = vcmp.ge.s32.totalorder %v36_v30, %v4616_v6  ;;  %v4324_v28 = vld [vmem:[%s6200_s1 + $0x1c0] ss:$16 sps:$4 sm:$0xff]  }
  0x18   :  { %4242 = vmatprep.subr.msk.mxu0 %vm156_vm0, %v4561_v15  ;;  %vm140_vm3 = vmand %vm74_vm11, %vm108_vm12  ;;  %vm121_vm11 = vcmp.lt.s32.totalorder %v52_v29, %v4623_v11  ;;  %vm86_vm0 = vcmp.ge.s32.totalorder %v51_v31, %v4616_v6  ;;  %v4321_v29 = vld [vmem:[%s6200_s1 + $0x1c8] ss:$16 sps:$4 sm:$0xff]  }
  0x19   :  { %4243 = vmatpush3.msk.msra.mxu0 %vm140_vm3, %v4561_v15  ;;  %vm155_vm6 = vmand %vm89_vm14, %vm123_vm15  ;;  %vm105_vm14 = vcmp.lt.s32.totalorder %v36_v30, %v4623_v11  ;;  %vm70_vm3 = vcmp.ge.s32.totalorder %v35_v32, %v4616_v6  ;;  %v4325_v30 = vld [vmem:[%s6200_s1 + $0x1a4] ss:$16 sps:$4 sm:$0xff]  }
  0x1a   :  { %4244 = vmatprep.subr.msk.mxu0 %vm155_vm6, %v4561_v15  ;;  %vm139_vm9 = vmand %vm73_vm1, %vm107_vm2  ;;  %vm120_vm1 = vcmp.lt.s32.totalorder %v51_v31, %v4623_v11  ;;  %vm85_vm6 = vcmp.ge.s32.totalorder %v50_v33, %v4616_v6  ;;  %v4329_v31 = vld [vmem:[%s6200_s1 + $0x1ac] ss:$16 sps:$4 sm:$0xff]  }
  0x1b   :  { %4245 = vmatpush3.msk.msra.mxu0 %vm139_vm9, %v4561_v15  ;;  %vm154_vm12 = vmand %vm88_vm4, %vm122_vm5  ;;  %vm104_vm4 = vcmp.lt.s32.totalorder %v35_v32, %v4623_v11  ;;  %vm69_vm9 = vcmp.ge.s32.totalorder %v34_v34, %v4616_v6  ;;  %v4330_v32 = vld [vmem:[%s6200_s1 + $0x1a0] ss:$16 sps:$4 sm:$0xff]  }
  0x1c   :  { %4246 = vmatprep.subr.msk.mxu0 %vm154_vm12, %v4561_v15  ;;  %vm138_vm15 = vmand %vm72_vm7, %vm106_vm8  ;;  %vm119_vm7 = vcmp.lt.s32.totalorder %v50_v33, %v4623_v11  ;;  %vm84_vm12 = vcmp.ge.s32.totalorder %v49_v35, %v4616_v6  ;;  %v4327_v33 = vld [vmem:[%s6200_s1 + $0x1a8] ss:$16 sps:$4 sm:$0xff]  }
  0x1d   :  { %4247 = vmatpush3.msk.msra.mxu0 %vm138_vm15, %v4561_v15  ;;  %vm153_vm2 = vmand %vm87_vm10, %vm121_vm11  ;;  %vm103_vm10 = vcmp.lt.s32.totalorder %v34_v34, %v4623_v11  ;;  %vm68_vm15 = vcmp.ge.s32.totalorder %v33_v36, %v4616_v6  ;;  %v4331_v34 = vld [vmem:[%s6200_s1 + $0x184] ss:$16 sps:$4 sm:$0xff]  }
  0x1e   :  { %4248 = vmatprep.subr.msk.mxu0 %vm153_vm2, %v4561_v15  ;;  %vm137_vm5 = vmand %vm71_vm13, %vm105_vm14  ;;  %vm118_vm13 = vcmp.lt.s32.totalorder %v49_v35, %v4623_v11  ;;  %vm83_vm2 = vcmp.ge.s32.totalorder %v48_v37, %v4616_v6  ;;  %v4335_v35 = vld [vmem:[%s6200_s1 + $0x18c] ss:$16 sps:$4 sm:$0xff]  }
  0x1f   :  { %4249 = vmatpush3.msk.msra.mxu0 %vm137_vm5, %v4561_v15  ;;  %vm152_vm8 = vmand %vm86_vm0, %vm120_vm1  ;;  %vm102_vm0 = vcmp.lt.s32.totalorder %v33_v36, %v4623_v11  ;;  %vm67_vm5 = vcmp.ge.s32.totalorder %v32_v38, %v4616_v6  ;;  %v4336_v36 = vld [vmem:[%s6200_s1 + $0x180] ss:$16 sps:$4 sm:$0xff]  }
  0x20   :  { %4250 = vmatprep.subr.msk.mxu0 %vm152_vm8, %v4561_v15  ;;  %vm136_vm11 = vmand %vm70_vm3, %vm104_vm4  ;;  %vm117_vm3 = vcmp.lt.s32.totalorder %v48_v37, %v4623_v11  ;;  %vm101_vm8 = vcmp.lt.s32.totalorder %v32_v38, %v4623_v11  ;;  %v4333_v37 = vld [vmem:[%s6200_s1 + $0x188] ss:$16 sps:$4 sm:$0xff]  }
  0x21   :  { %4251 = vmatpush3.msk.msra.mxu0 %vm136_vm11, %v4561_v15  ;;  %vm151_vm14 = vmand %vm85_vm6, %vm119_vm7  ;;  %vm82_vm7 = vcmp.ge.s32.totalorder %v47_v39, %v4616_v6  ;;  %vm66_vm11 = vcmp.ge.s32.totalorder %v4608_v2, %v4616_v6  ;;  %v4289_v6 = vld [vmem:[%s6200_s1 + $0x64] ss:$16 sps:$4 sm:$0xff]  }
  0x22   :  { %4252 = vmatprep.subr.msk.mxu0 %vm151_vm14, %v4561_v15  ;;  %vm135_vm1 = vmand %vm69_vm9, %vm103_vm10  ;;  %vm116_vm9 = vcmp.lt.s32.totalorder %v47_v39, %v4623_v11  ;;  %750 = vmatprep.subr.bf16.mxu1 %v4289_v6 }
  0x23   :  { %4253 = vmatpush3.msk.msra.mxu0 %vm135_vm1, %v4561_v15  ;;  %vm150_vm4 = vmand %vm84_vm12, %vm118_vm13  ;;  %vm100_vm12 = vcmp.lt.s32.totalorder %v4608_v2, %v4623_v11  ;;  %v4299_v11 = vld [vmem:[%s6200_s1 + $0x4c] ss:$16 sps:$4 sm:$0xff]   ;;  %751 = vmatpush1.bf16.msra.mxu1 %v4294_v9 }
  0x24   :  { %4254 = vmatprep.subr.msk.mxu0 %vm150_vm4, %v4561_v15  ;;  %vm134_vm6 = vmand %vm68_vm15, %vm102_vm0  ;;  %vm298_vm0 = vcmask 130048   ;;  %752 = vmatprep.subr.bf16.mxu1 %v4295_v10 }
  0x25   :  { %4255 = vmatpush3.msk.msra.mxu0 %vm134_vm6, %v4561_v15  ;;  %vm149_vm10 = vmand %vm83_vm2, %vm117_vm3 }
  0x26   :  { %4256 = vmatprep.subr.msk.mxu0 %vm149_vm10, %v4561_v15  ;;  %vm133_vm13 = vmand %vm67_vm5, %vm101_vm8 }
  0x27   :  { %4257 = vmatpush3.msk.msra.mxu0 %vm133_vm13, %v4561_v15  ;;  %vm148_vm14 = vmand %vm82_vm7, %vm116_vm9  ;;  %753 = vmatpush1.bf16.msra.mxu1 %v4300_v13 }
  0x28   :  { %4258 = vmatprep.subr.msk.mxu0 %vm148_vm14, %v4561_v15  ;;  %vm132_vm15 = vmand %vm66_vm11, %vm100_vm12  ;;  %754 = vmatprep.subr.bf16.mxu1 %v4301_v14  ;;  %v4562_v14 = vmov 0.0  }
  0x29   :  { %4259 = vmatpush3.msk.msra.mxu0 %vm132_vm15, %v4561_v15  ;;  %v4305_v15 = vld [vmem:[%s6200_s1 + $0x2c] ss:$16 sps:$4 sm:$0xff]  }
  0x2a   :  { %293 = vmatmul.mubr.f32.vlgmr.msra.gmra.mxu0 %v28_v41  ;;  %783 = vmatprep.subr.bf16.mxu0 %v4269_v53  ;;  %v4353_v53 = vld [vmem:[%s6200_s1 + $0x12c] ss:$16 sps:$4 sm:$0xff]  }
  0x2b   :  { %784 = vmatpush1.bf16.msra.mxu0 %v4267_v52  ;;  %755 = vmatpush1.bf16.msra.mxu1 %v4306_v17  ;;  %v4351_v52 = vld [vmem:[%s6200_s1 + $0x128] ss:$16 sps:$4 sm:$0xff]  }
  0x2c   :  { %785 = vmatprep.subr.bf16.mxu0 %v4275_v57  ;;  %756 = vmatprep.subr.bf16.mxu1 %v4307_v18  ;;  %v4357_v57 = vld [vmem:[%s6200_s1 + $0x108] ss:$16 sps:$4 sm:$0xff]   ;;  %v880_v18 = vld [vmem:[%s6201_s3 + $0x180] sm:$0xff] }
  0x2f   :  { %786 = vmatpush1.bf16.msra.mxu0 %v4273_v56  ;;  %757 = vmatpush1.bf16.msra.mxu1 %v4312_v21  ;;  %v4359_v56 = vld [vmem:[%s6200_s1 + $0x10c] ss:$16 sps:$4 sm:$0xff]   ;;  %v1012_v21 = vld [vmem:[%s6201_s3 + $0x5a0] sm:$0xff] }
  0x30   :  { %787 = vmatprep.subr.bf16.mxu0 %v4281_v61  ;;  %758 = vmatprep.subr.bf16.mxu1 %v4313_v22  ;;  %v1016_v61 = vld [vmem:[%s6201_s3 + $0x5c0] sm:$0xff] }
  0x33   :  { %788 = vmatpush1.bf16.msra.mxu0 %v4279_v60  ;;  %759 = vmatpush2.bf16.msra.mxu1 %v4318_v25  ;;  %v892_v60 = vld [vmem:[%s6201_s3 + $0x1e0] sm:$0xff] }
  0x34   :  { %789 = vmatprep.subr.bf16.mxu0 %v4287_v0  ;;  %760 = vmatprep.subr.bf16.mxu1 %v4319_v26  ;;  %v3900_v62 = vcombine.low %v888_v59, %v892_v60  ;;  %v3901_v63 = vcombine.high %v888_v59, %v892_v60  ;;  %v1020_v0 = vld [vmem:[%s6201_s3 + $0x5e0] sm:$0xff] }
  0x35   :  { %v4029_v5 = vcombine.high %v1016_v61, %v1020_v0  ;;  %v876_v25 = vld [vmem:[%s6201_s3 + $0x160] sm:$0xff] }
  0x36   :  { %v1000_v26 = vld [vmem:[%s6201_s3 + $0x540] sm:$0xff] }
  0x37   :  { %790 = vmatpush1.bf16.msra.mxu0 %v4285_v4  ;;  %761 = vmatpush2.bf16.msra.mxu1 %v4324_v28  ;;  %v4028_v4 = vcombine.low %v1016_v61, %v1020_v0  ;;  %v968_v59 = vld [vmem:[%s6201_s3 + $0x440] sm:$0xff] }
  0x38   :  { %791 = vmatprep.subr.bf16.mxu0 %v4293_v7  ;;  %762 = vmatprep.subr.bf16.mxu1 %v4325_v30  ;;  %v972_v60 = vld [vmem:[%s6201_s3 + $0x460] sm:$0xff] }
  0x39   :  { %v3981_v0 = vcombine.high %v968_v59, %v972_v60 }
  0x3b   :  { %792 = vmatpush1.bf16.msra.mxu0 %v4291_v8  ;;  %763 = vmatpush2.bf16.msra.mxu1 %v4330_v32  ;;  %v864_v32 = vld [vmem:[%s6201_s3 + $0x100] sm:$0xff] }
  0x3c   :  { %793 = vmatprep.subr.bf16.mxu0 %v4299_v11  ;;  %764 = vmatprep.subr.bf16.mxu1 %v4331_v34  ;;  %v992_v34 = vld [vmem:[%s6201_s3 + $0x500] sm:$0xff] }
  0x3f   :  { %794 = vmatpush1.bf16.msra.mxu0 %v4297_v12  ;;  %765 = vmatpush2.bf16.msra.mxu1 %v4336_v36  ;;  %v319_v12 = vadd.s32 128, %v4610_v3 }
  0x40   :  { %795 = vmatprep.subr.bf16.mxu0 %v4305_v15 }
  0x43   :  { %796 = vmatpush1.bf16.msra.mxu0 %v4303_v16 }
  0x44   :  { %797 = vmatprep.subr.bf16.mxu0 %v4311_v19 }
  0x47   :  { %798 = vmatpush1.bf16.msra.mxu0 %v4309_v20  ;;  %v884_v20 = vld [vmem:[%s6201_s3 + $0x1a0] sm:$0xff] }
  0x48   :  { %799 = vmatprep.subr.bf16.mxu0 %v4317_v23  ;;  %v3893_v23 = vcombine.high %v880_v18, %v884_v20  ;;  %v3892_v28 = vcombine.low %v880_v18, %v884_v20  ;;  %v944_v20 = vld [vmem:[%s6201_s3 + $0x380] sm:$0xff] }
  0x4b   :  { %800 = vmatpush2.bf16.msra.mxu0 %v4315_v24 }
  0x4c   :  { %801 = vmatprep.subr.bf16.mxu0 %v4323_v27  ;;  %v1004_v27 = vld [vmem:[%s6201_s3 + $0x560] sm:$0xff] }
  0x4f   :  { %802 = vmatpush2.bf16.msra.mxu0 %v4321_v29 }
  0x50   :  { %803 = vmatprep.subr.bf16.mxu0 %v4329_v31  ;;  %v4013_v31 = vcombine.high %v1000_v26, %v1004_v27 }
  0x53   :  { %804 = vmatpush2.bf16.msra.mxu0 %v4327_v33  ;;  %v868_v33 = vld [vmem:[%s6201_s3 + $0x120] sm:$0xff] }
  0x54   :  { %805 = vmatprep.subr.bf16.mxu0 %v4335_v35  ;;  %v996_v35 = vld [vmem:[%s6201_s3 + $0x520] sm:$0xff] }
  0x57   :  { %806 = vmatpush2.bf16.msra.mxu0 %v4333_v37  ;;  %v4012_v37 = vcombine.low %v1000_v26, %v1004_v27  ;;  %v940_v26 = vld [vmem:[%s6201_s3 + $0x360] sm:$0xff] }
  0x58   :  { %v1064_v27 = vld [vmem:[%s6201_s3 + $0x740] sm:$0xff] }
  0xea   :  { %v4260_v42 = vpop.f32.mrf.mxu0 }
  0xec   :  { %v4261_v43 = vpop.f32.mrf.mxu0 }
  0xed   :  { %v4262_v44 = vadd.f32 %v4261_v43, %v4260_v42  ;;  %v4337_v43 = vld [vmem:[%s6200_s1 + $0x164] ss:$16 sps:$4 sm:$0xff]  }
  0xee   :  { %766 = vmatprep.subr.bf16.mxu1 %v4337_v43  ;;  %v984_v43 = vld [vmem:[%s6201_s3 + $0x4c0] sm:$0xff] }
  0xef   :  { %v299_v45 = vsel %vm298_vm0, %v4262_v44, -inf }
  0xf0   :  { %300 = vmax.xlane.f32.xlu0 %v299_v45  ;;  %v4339_v45 = vld [vmem:[%s6200_s1 + $0x168] ss:$16 sps:$4 sm:$0xff]  }
 0x179   :  { %v301_v46 = vpop.xlane.xlu0 %300 }
 0x17a   :  { %vm302_vm1 = vcmp.ge.f32.partialorder %v4262_v44, %v301_v46  ;;  %v4341_v44 = vld [vmem:[%s6200_s1 + $0x16c] ss:$16 sps:$4 sm:$0xff]   ;;  %v4342_v46 = vld [vmem:[%s6200_s1 + $0x160] ss:$16 sps:$4 sm:$0xff]  }
 0x17b   :  { %v303_v47 = vsel %vm302_vm1, %v4610_v3, 16  ;;  %807 = vmatprep.subr.bf16.mxu0 %v4341_v44  ;;  %767 = vmatpush2.bf16.msra.mxu1 %v4342_v46  ;;  %v988_v44 = vld [vmem:[%s6201_s3 + $0x4e0] sm:$0xff]  ;;  %v4004_v46 = vcombine.low %v992_v34, %v996_v35 }
 0x17c   :  { %v4761_v48 = vsel %vm298_vm0, %v303_v47, 2147483647  ;;  %808 = vmatpush2.bf16.msra.mxu0 %v4339_v45  ;;  %v4343_v47 = vld [vmem:[%s6200_s1 + $0x144] ss:$16 sps:$4 sm:$0xff]   ;;  %v3876_v45 = vcombine.low %v864_v32, %v868_v33 }
 0x17d   :  { %v306_v49 = vshra.s32 %v4761_v48, 16  ;;  %v305_v38 = vand.u32 65535, %v4761_v48  ;;  %v4347_v48 = vld [vmem:[%s6200_s1 + $0x14c] ss:$16 sps:$4 sm:$0xff]   ;;  %768 = vmatprep.subr.bf16.mxu1 %v4343_v47 }
 0x17e   :  { %809 = vmatprep.subr.bf16.mxu0 %v4347_v48  ;;  %v3997_v48 = vcombine.high %v984_v43, %v988_v44 }
 0x17f   :  { %v4764_v50 = vcvt.s32.f32 %v306_v49  ;;  %v307_v41 = vcvt.s32.f32 %v305_v38  ;;  %v4345_v49 = vld [vmem:[%s6200_s1 + $0x148] ss:$16 sps:$4 sm:$0xff]   ;;  %v3877_v38 = vcombine.high %v864_v32, %v868_v33  ;;  %v928_v33 = vld [vmem:[%s6201_s3 + $0x300] sm:$0xff] }
 0x180   :  { %810 = vmatpush2.bf16.msra.mxu0 %v4345_v49  ;;  %v848_v49 = vld [vmem:[%s6201_s3 + $0x80] sm:$0xff] }
 0x181   :  { %309 = vmin.xlane.f32.xlu0 %v4764_v50  ;;  %811 = vmatprep.subr.bf16.mxu0 %v4353_v53 }
 0x184   :  { %812 = vmatpush2.bf16.msra.mxu0 %v4351_v52  ;;  %v980_v52 = vld [vmem:[%s6201_s3 + $0x4a0] sm:$0xff] }
 0x185   :  { %813 = vmatprep.subr.bf16.mxu0 %v4359_v56 }
 0x188   :  { %814 = vmatpush2.bf16.msra.mxu0 %v4357_v57  ;;  %v840_v57 = vld [vmem:[%s6201_s3 + $0x40] sm:$0xff] }
 0x189   :  { %2451 = vmatprep.subr.bf16.mxu0 %v4029_v5  ;;  %v836_v5 = vld [vmem:[%s6201_s3 + $0x20] sm:$0xff] }
 0x20a   :  { %v310_v39 = vpop.xlane.xlu0 %309 }
 0x20b   :  { %vm311_vm2 = vcmp.eq.f32.partialorder %v4764_v50, %v310_v39  ;;  %v4348_v50 = vld [vmem:[%s6200_s1 + $0x140] ss:$16 sps:$4 sm:$0xff]   ;;  %v316_v6 = vcvt.f32.s32 %v310_v39  ;;  %v4005_v39 = vcombine.high %v992_v34, %v996_v35 }
 0x20c   :  { %v312_v42 = vsel %vm311_vm2, %v307_v41, inf  ;;  %769 = vmatpush2.bf16.msra.mxu1 %v4348_v50  ;;  %v856_v41 = vld [vmem:[%s6201_s3 + $0xc0] sm:$0xff] }
 0x20d   :  { %313 = vmin.xlane.f32.xlu1 %v312_v42  ;;  %770 = vmatprep.subr.bf16.mxu1 %v4349_v51  ;;  %v317_v8 = vshll.u32 %v316_v6, 16  ;;  %v860_v42 = vld [vmem:[%s6201_s3 + $0xe0] sm:$0xff] }
 0x20e   :  { %v3869_v47 = vcombine.high %v856_v41, %v860_v42  ;;  %v852_v50 = vld [vmem:[%s6201_s3 + $0xa0] sm:$0xff]  ;;  %v3868_v53 = vcombine.low %v856_v41, %v860_v42 }
 0x20f   :  { %v976_v51 = vld [vmem:[%s6201_s3 + $0x480] sm:$0xff]  ;;  %v3860_v61 = vcombine.low %v848_v49, %v852_v50 }
 0x210   :  { %771 = vmatpush2.bf16.msra.mxu1 %v4354_v54  ;;  %v3996_v54 = vcombine.low %v984_v43, %v988_v44  ;;  %v3989_v56 = vcombine.high %v976_v51, %v980_v52  ;;  %v960_v6 = vld [vmem:[%s6201_s3 + $0x400] sm:$0xff] }
 0x211   :  { %772 = vmatprep.subr.bf16.mxu1 %v4355_v55  ;;  %v3861_v55 = vcombine.high %v848_v49, %v852_v50  ;;  %v932_v34 = vld [vmem:[%s6201_s3 + $0x320] sm:$0xff] }
 0x212   :  { %v1056_v35 = vld [vmem:[%s6201_s3 + $0x700] sm:$0xff] }
 0x213   :  { %v920_v42 = vld [vmem:[%s6201_s3 + $0x2c0] sm:$0xff] }
 0x214   :  { %773 = vmatpush2.bf16.msra.mxu1 %v4360_v58  ;;  %v844_v58 = vld [vmem:[%s6201_s3 + $0x60] sm:$0xff] }
 0x215   :  { %2410 = vmatprep.subr.bf16.mxu1 %v3901_v63  ;;  %v3853_v63 = vcombine.high %v840_v57, %v844_v58  ;;  %v924_v43 = vld [vmem:[%s6201_s3 + $0x2e0] sm:$0xff] }
 0x216   :  { %v1048_v44 = vld [vmem:[%s6201_s3 + $0x6c0] sm:$0xff] }
 0x217   :  { %v912_v50 = vld [vmem:[%s6201_s3 + $0x280] sm:$0xff] }
 0x296   :  { %v314_v7 = vpop.xlane.xlu1 %313 }
 0x297   :  { %v315_v9 = vcvt.f32.s32 %v314_v7  ;;  %v964_v7 = vld [vmem:[%s6201_s3 + $0x420] sm:$0xff] }
 0x299   :  { %v318_v10 = vadd.s32 %v317_v8, %v315_v9  ;;  %v3852_v8 = vcombine.low %v840_v57, %v844_v58  ;;  %v3980_v9 = vcombine.low %v968_v59, %v972_v60  ;;  %v904_v60 = vld [vmem:[%s6201_s3 + $0x240] sm:$0xff] }
 0x29b   :  { %v320_v11 = vmul.u32 16, %v318_v10 }
 0x29d   :  { %v323_v13 = vadd.s32 16, %v320_v11  ;;  %vm321_vm3 = vcmp.ge.s32.totalorder %v4610_v3, %v320_v11  ;;  %vm322_vm8 = vcmp.ge.s32.totalorder %v319_v12, %v320_v11  ;;  %v3973_v11 = vcombine.high %v960_v6, %v964_v7 }
 0x29f   :  { %vm324_vm4 = vcmp.lt.s32.totalorder %v4610_v3, %v323_v13  ;;  %vm325_vm5 = vcmp.lt.s32.totalorder %v319_v12, %v323_v13  ;;  %v1008_v3 = vld [vmem:[%s6201_s3 + $0x580] sm:$0xff] }
 0x2a0   :  { %vm326_vm6 = vmand %vm321_vm3, %vm324_vm4  ;;  %v4021_v24 = vcombine.high %v1008_v3, %v1012_v21  ;;  %v4020_v29 = vcombine.low %v1008_v3, %v1012_v21  ;;  %v952_v12 = vld [vmem:[%s6201_s3 + $0x3c0] sm:$0xff] }
 0x2a1   :  { %vm327_vm7 = vmand %vm322_vm8, %vm325_vm5  ;;  %v3778_v15 = vsel %vm326_vm6, 1.0, %v4562_v14  ;;  %v956_v13 = vld [vmem:[%s6201_s3 + $0x3e0] sm:$0xff] }
 0x2a2   :  { %v3779_v16 = vsel %vm327_vm7, 1.0, %v4562_v14  ;;  %v332_v17 = vmul.f32 %v3778_v15, %v4744_v40  ;;  %v1080_v14 = vld [vmem:[%s6201_s3 + $0x7c0] sm:$0xff]  ;;  %v3965_v18 = vcombine.high %v952_v12, %v956_v13 }
 0x2a3   :  { %v333_v19 = vmul.f32 %v3779_v16, %v4606_v1  ;;  %v872_v1 = vld [vmem:[%s6201_s3 + $0x140] sm:$0xff] }
 0x2a4   :  { %v334_v22 = vpack.c.bf16 %v332_v17, %v332_v17  ;;  %v3885_v30 = vcombine.high %v872_v1, %v876_v25  ;;  %v3884_v36 = vcombine.low %v872_v1, %v876_v25  ;;  %v1084_v15 = vld [vmem:[%s6201_s3 + $0x7e0] sm:$0xff]  ;;  %v3972_v17 = vcombine.low %v960_v6, %v964_v7 }
 0x2a5   :  { %v335_v40 = vpack.c.bf16 %v333_v19, %v333_v19  ;;  %v4093_v19 = vcombine.high %v1080_v14, %v1084_v15  ;;  %v948_v3 = vld [vmem:[%s6201_s3 + $0x3a0] sm:$0xff] }
 0x2a6   :  { %v1072_v21 = vld [vmem:[%s6201_s3 + $0x780] sm:$0xff] }
 0x2a7   :  { %774 = vmatprep.mubr.bf16.mxu1 %v335_v40  ;;  %815 = vmatprep.mubr.bf16.mxu0 %v335_v40  ;;  %v3964_v40 = vcombine.low %v952_v12, %v956_v13  ;;  %v936_v25 = vld [vmem:[%s6201_s3 + $0x340] sm:$0xff] }
 0x2a8   :  { %775 = vmatmul.mubr.bf16.vlgmr.msra.gmra.mxu1 %v334_v22  ;;  %816 = vmatmul.mubr.bf16.vlgmr.msra.gmra.mxu0 %v334_v22  ;;  %v1076_v22 = vld [vmem:[%s6201_s3 + $0x7a0] sm:$0xff] }
 0x2a9   :  { %2411 = vmatpush1.bf16.msra.mxu1 %v3900_v62  ;;  %2452 = vmatpush1.bf16.msra.mxu0 %v4028_v4  ;;  %v3988_v62 = vcombine.low %v976_v51, %v980_v52  ;;  %v832_v4 = vld [vmem:[%s6201_s3] sm:$0xff]  ;;  %v4085_v1 = vcombine.high %v1072_v21, %v1076_v22 }
 0x2aa   :  { %2412 = vmatprep.subr.bf16.mxu1 %v3893_v23  ;;  %2453 = vmatprep.subr.bf16.mxu0 %v4021_v24  ;;  %v3845_v10 = vcombine.high %v832_v4, %v836_v5  ;;  %v3844_v16 = vcombine.low %v832_v4, %v836_v5  ;;  %v4092_v23 = vcombine.low %v1080_v14, %v1084_v15  ;;  %v916_v51 = vld [vmem:[%s6201_s3 + $0x2a0] sm:$0xff]  ;;  %v889_v15 = vld [vmem:[%s6201_s3 + $0x1c8] sm:$0xff] }
 0x2ab   :  { %v3957_v24 = vcombine.high %v944_v20, %v948_v3  ;;  %v1040_v52 = vld [vmem:[%s6201_s3 + $0x680] sm:$0xff]  ;;  %v3924_v58 = vcombine.low %v912_v50, %v916_v51 }
 0x2ac   :  { %v896_v7 = vld [vmem:[%s6201_s3 + $0x200] sm:$0xff] }
 0x2ad   :  { %2413 = vmatpush1.bf16.msra.mxu1 %v3892_v28  ;;  %2454 = vmatpush1.bf16.msra.mxu0 %v4020_v29  ;;  %v1068_v28 = vld [vmem:[%s6201_s3 + $0x760] sm:$0xff]  ;;  %v3956_v29 = vcombine.low %v944_v20, %v948_v3 }
 0x2ae   :  { %2414 = vmatprep.subr.bf16.mxu1 %v3885_v30  ;;  %2455 = vmatprep.subr.bf16.mxu0 %v4013_v31  ;;  %v4084_v30 = vcombine.low %v1072_v21, %v1076_v22  ;;  %v3949_v31 = vcombine.high %v936_v25, %v940_v26  ;;  %v4077_v32 = vcombine.high %v1064_v27, %v1068_v28  ;;  %v5171_v22 = vsub.s32 0, %v4608_v2 }
 0x2b1   :  { %2415 = vmatpush1.bf16.msra.mxu1 %v3884_v36  ;;  %2456 = vmatpush1.bf16.msra.mxu0 %v4012_v37  ;;  %v1060_v36 = vld [vmem:[%s6201_s3 + $0x720] sm:$0xff]  ;;  %v3948_v37 = vcombine.low %v936_v25, %v940_v26 }
 0x2b2   :  { %2416 = vmatprep.subr.bf16.mxu1 %v3877_v38  ;;  %2457 = vmatprep.subr.bf16.mxu0 %v4005_v39  ;;  %v4076_v38 = vcombine.low %v1064_v27, %v1068_v28  ;;  %v3941_v39 = vcombine.high %v928_v33, %v932_v34  ;;  %v4069_v41 = vcombine.high %v1056_v35, %v1060_v36 }
 0x2b5   :  { %2417 = vmatpush1.bf16.msra.mxu1 %v3876_v45  ;;  %2458 = vmatpush1.bf16.msra.mxu0 %v4004_v46  ;;  %v1052_v45 = vld [vmem:[%s6201_s3 + $0x6e0] sm:$0xff]  ;;  %v3940_v46 = vcombine.low %v928_v33, %v932_v34 }
 0x2b6   :  { %2418 = vmatprep.subr.bf16.mxu1 %v3869_v47  ;;  %2459 = vmatprep.subr.bf16.mxu0 %v3997_v48  ;;  %v4068_v47 = vcombine.low %v1056_v35, %v1060_v36  ;;  %v3933_v48 = vcombine.high %v920_v42, %v924_v43  ;;  %v4061_v49 = vcombine.high %v1048_v44, %v1052_v45 }
 0x2b9   :  { %2419 = vmatpush1.bf16.msra.mxu1 %v3868_v53  ;;  %2460 = vmatpush1.bf16.msra.mxu0 %v3996_v54  ;;  %v1044_v53 = vld [vmem:[%s6201_s3 + $0x6a0] sm:$0xff]  ;;  %v3932_v54 = vcombine.low %v920_v42, %v924_v43 }
 0x2ba   :  { %2420 = vmatprep.subr.bf16.mxu1 %v3861_v55  ;;  %2461 = vmatprep.subr.bf16.mxu0 %v3989_v56  ;;  %v4060_v55 = vcombine.low %v1048_v44, %v1052_v45  ;;  %v3925_v56 = vcombine.high %v912_v50, %v916_v51  ;;  %v4053_v57 = vcombine.high %v1040_v52, %v1044_v53  ;;  %v881_v44 = vld [vmem:[%s6201_s3 + $0x188] sm:$0xff] }
 0x2bb   :  { %v4052_v59 = vcombine.low %v1040_v52, %v1044_v53 }
 0x2bd   :  { %2421 = vmatpush1.bf16.msra.mxu1 %v3860_v61  ;;  %2462 = vmatpush1.bf16.msra.mxu0 %v3988_v62  ;;  %v908_v61 = vld [vmem:[%s6201_s3 + $0x260] sm:$0xff] }
 0x2be   :  { %2422 = vmatprep.subr.bf16.mxu1 %v3853_v63  ;;  %2463 = vmatprep.subr.bf16.mxu0 %v3981_v0  ;;  %v1032_v62 = vld [vmem:[%s6201_s3 + $0x640] sm:$0xff]  ;;  %v3917_v63 = vcombine.high %v904_v60, %v908_v61  ;;  %v3916_v4 = vcombine.low %v904_v60, %v908_v61 }
 0x2bf   :  { %v1036_v0 = vld [vmem:[%s6201_s3 + $0x660] sm:$0xff] }
 0x2c0   :  { %v4044_v5 = vcombine.low %v1032_v62, %v1036_v0  ;;  %v4045_v6 = vcombine.high %v1032_v62, %v1036_v0  ;;  %v865_v0 = vld [vmem:[%s6201_s3 + $0x108] sm:$0xff] }
 0x2c1   :  { %2423 = vmatpush1.bf16.msra.mxu1 %v3852_v8  ;;  %2464 = vmatpush1.bf16.msra.mxu0 %v3980_v9  ;;  %v900_v8 = vld [vmem:[%s6201_s3 + $0x220] sm:$0xff] }
 0x2c2   :  { %2424 = vmatprep.subr.bf16.mxu1 %v3845_v10  ;;  %2465 = vmatprep.subr.bf16.mxu0 %v3973_v11  ;;  %v1024_v9 = vld [vmem:[%s6201_s3 + $0x600] sm:$0xff]  ;;  %v3909_v10 = vcombine.high %v896_v7, %v900_v8  ;;  %v3908_v12 = vcombine.low %v896_v7, %v900_v8 }
 0x2c3   :  { %v1028_v11 = vld [vmem:[%s6201_s3 + $0x620] sm:$0xff] }
 0x2c4   :  { %v4036_v13 = vcombine.low %v1024_v9, %v1028_v11  ;;  %v4037_v14 = vcombine.high %v1024_v9, %v1028_v11  ;;  %v857_v11 = vld [vmem:[%s6201_s3 + $0xc8] sm:$0xff] }
 0x2c5   :  { %2425 = vmatpush1.bf16.msra.mxu1 %v3844_v16  ;;  %2466 = vmatpush1.bf16.msra.mxu0 %v3972_v17  ;;  %v893_v16 = vld [vmem:[%s6201_s3 + $0x1e8] sm:$0xff] }
 0x2c6   :  { %2426 = vmatprep.subr.bf16.mxu1 %v3965_v18  ;;  %2467 = vmatprep.subr.bf16.mxu0 %v4093_v19  ;;  %v1017_v17 = vld [vmem:[%s6201_s3 + $0x5c8] sm:$0xff]  ;;  %v3903_v18 = vcombine.high %v889_v15, %v893_v16  ;;  %v3902_v20 = vcombine.low %v889_v15, %v893_v16 }
 0x2c7   :  { %v1021_v19 = vld [vmem:[%s6201_s3 + $0x5e8] sm:$0xff] }
 0x2c8   :  { %v4030_v3 = vcombine.low %v1017_v17, %v1021_v19  ;;  %v4031_v21 = vcombine.high %v1017_v17, %v1021_v19  ;;  %v849_v19 = vld [vmem:[%s6201_s3 + $0x88] sm:$0xff] }
 0x2c9   :  { %2427 = vmatpush2.bf16.msra.mxu1 %v3964_v40  ;;  %2468 = vmatpush2.bf16.msra.mxu0 %v4092_v23  ;;  %v412_v40 = vsub.s32 2, %v4608_v2  ;;  %v400_v23 = vld [vmem:[%s6202_s2] sm:$0xf] }
 0x2ca   :  { %2428 = vmatprep.subr.bf16.mxu1 %v3957_v24  ;;  %2469 = vmatprep.subr.bf16.mxu0 %v4085_v1  ;;  %v5178_v24 = vsub.s32 1, %v4608_v2  ;;  %v416_v1 = vsub.s32 3, %v4608_v2  ;;  %v405_v25 = vrot.slane %v400_v23, %v5171_v22 }
 0x2cb   :  { %v413_v26 = vrot.slane %v400_v23, %v412_v40 }
 0x2cc   :  { %v409_v27 = vrot.slane %v400_v23, %v5178_v24  ;;  %v417_v28 = vrot.slane %v400_v23, %v416_v1 }
 0x2cd   :  { %2429 = vmatpush2.bf16.msra.mxu1 %v3956_v29  ;;  %2470 = vmatpush2.bf16.msra.mxu0 %v4084_v30 }
 0x2ce   :  { %2430 = vmatprep.subr.bf16.mxu1 %v3949_v31  ;;  %2471 = vmatprep.subr.bf16.mxu0 %v4077_v32 }
 0x2d1   :  { %2431 = vmatpush2.bf16.msra.mxu1 %v3948_v37  ;;  %2472 = vmatpush2.bf16.msra.mxu0 %v4076_v38 }
 0x2d2   :  { %2432 = vmatprep.subr.bf16.mxu1 %v3941_v39  ;;  %2473 = vmatprep.subr.bf16.mxu0 %v4069_v41 }
 0x2d5   :  { %2433 = vmatpush2.bf16.msra.mxu1 %v3940_v46  ;;  %2474 = vmatpush2.bf16.msra.mxu0 %v4068_v47  ;;  %v885_v47 = vld [vmem:[%s6201_s3 + $0x1a8] sm:$0xff] }
 0x2d6   :  { %2434 = vmatprep.subr.bf16.mxu1 %v3933_v48  ;;  %2475 = vmatprep.subr.bf16.mxu0 %v4061_v49  ;;  %v1009_v48 = vld [vmem:[%s6201_s3 + $0x588] sm:$0xff]  ;;  %v3894_v60 = vcombine.low %v881_v44, %v885_v47 }
 0x2d7   :  { %v1013_v49 = vld [vmem:[%s6201_s3 + $0x5a8] sm:$0xff] }
 0x2d8   :  { %v4022_v61 = vcombine.low %v1009_v48, %v1013_v49 }
 0x2d9   :  { %2435 = vmatpush2.bf16.msra.mxu1 %v3932_v54  ;;  %2476 = vmatpush2.bf16.msra.mxu0 %v4060_v55  ;;  %v873_v54 = vld [vmem:[%s6201_s3 + $0x148] sm:$0xff]  ;;  %v3895_v55 = vcombine.high %v881_v44, %v885_v47 }
 0x2da   :  { %2436 = vmatprep.subr.bf16.mxu1 %v3925_v56  ;;  %2477 = vmatprep.subr.bf16.mxu0 %v4053_v57  ;;  %v4023_v56 = vcombine.high %v1009_v48, %v1013_v49  ;;  %v877_v57 = vld [vmem:[%s6201_s3 + $0x168] sm:$0xff] }
 0x2db   :  { %v3887_v62 = vcombine.high %v873_v54, %v877_v57  ;;  %v3886_v7 = vcombine.low %v873_v54, %v877_v57  ;;  %v1081_v47 = vld [vmem:[%s6201_s3 + $0x7c8] sm:$0xff] }
 0x2dc   :  { %v1085_v48 = vld [vmem:[%s6201_s3 + $0x7e8] sm:$0xff] }
 0x2dd   :  { %2437 = vmatpush2.bf16.msra.mxu1 %v3924_v58  ;;  %2478 = vmatpush2.bf16.msra.mxu0 %v4052_v59  ;;  %v1001_v58 = vld [vmem:[%s6201_s3 + $0x548] sm:$0xff] }
 0x2de   :  { %2438 = vmatprep.subr.bf16.mxu1 %v3917_v63  ;;  %2479 = vmatprep.subr.bf16.mxu0 %v4045_v6  ;;  %v1005_v59 = vld [vmem:[%s6201_s3 + $0x568] sm:$0xff] }
 0x2df   :  { %v4015_v63 = vcombine.high %v1001_v58, %v1005_v59  ;;  %v997_v6 = vld [vmem:[%s6201_s3 + $0x528] sm:$0xff]  ;;  %v4014_v8 = vcombine.low %v1001_v58, %v1005_v59 }
 0x2e0   :  { %v945_v57 = vld [vmem:[%s6201_s3 + $0x388] sm:$0xff] }
 0x2e1   :  { %2439 = vmatpush2.bf16.msra.mxu1 %v3916_v4  ;;  %2480 = vmatpush2.bf16.msra.mxu0 %v4044_v5  ;;  %v869_v4 = vld [vmem:[%s6201_s3 + $0x128] sm:$0xff] }
 0x2e2   :  { %2440 = vmatprep.subr.bf16.mxu1 %v3909_v10  ;;  %2481 = vmatprep.subr.bf16.mxu0 %v4037_v14  ;;  %v993_v5 = vld [vmem:[%s6201_s3 + $0x508] sm:$0xff]  ;;  %v3879_v9 = vcombine.high %v865_v0, %v869_v4  ;;  %v3878_v15 = vcombine.low %v865_v0, %v869_v4 }
 0x2e3   :  { %v4007_v10 = vcombine.high %v993_v5, %v997_v6  ;;  %v989_v14 = vld [vmem:[%s6201_s3 + $0x4e8] sm:$0xff]  ;;  %v4006_v16 = vcombine.low %v993_v5, %v997_v6 }
 0x2e4   :  { %v949_v58 = vld [vmem:[%s6201_s3 + $0x3a8] sm:$0xff] }
 0x2e5   :  { %2441 = vmatpush2.bf16.msra.mxu1 %v3908_v12  ;;  %2482 = vmatpush2.bf16.msra.mxu0 %v4036_v13  ;;  %v861_v12 = vld [vmem:[%s6201_s3 + $0xe8] sm:$0xff] }
 0x2e6   :  { %2492 = vmatprep.subr.bf16.mxu1 %v3903_v18  ;;  %2533 = vmatprep.subr.bf16.mxu0 %v4031_v21  ;;  %v985_v13 = vld [vmem:[%s6201_s3 + $0x4c8] sm:$0xff]  ;;  %v3871_v17 = vcombine.high %v857_v11, %v861_v12  ;;  %v3870_v23 = vcombine.low %v857_v11, %v861_v12 }
 0x2e7   :  { %v3999_v18 = vcombine.high %v985_v13, %v989_v14  ;;  %v981_v21 = vld [vmem:[%s6201_s3 + $0x4a8] sm:$0xff] }
 0x2e8   :  { %v1073_v59 = vld [vmem:[%s6201_s3 + $0x788] sm:$0xff] }
 0x2e9   :  { %v937_v4 = vld [vmem:[%s6201_s3 + $0x348] sm:$0xff] }
 0x2ea   :  { %v941_v5 = vld [vmem:[%s6201_s3 + $0x368] sm:$0xff] }
 0x2eb   :  { %v1065_v6 = vld [vmem:[%s6201_s3 + $0x748] sm:$0xff] }
 0x2ec   :  { %v929_v12 = vld [vmem:[%s6201_s3 + $0x308] sm:$0xff] }
 0x368   :  { %v776_v29 = vpop.f32.mrf.mxu1  ;;  %v817_v30 = vpop.f32.mrf.mxu0 }
 0x369   :  { %v777_v31 = vadd.f32 %v776_v29, %v405_v25  ;;  %v818_v32 = vadd.f32 %v817_v30, %v413_v26  ;;  %v3998_v25 = vcombine.low %v985_v13, %v989_v14  ;;  %v845_v29 = vld [vmem:[%s6201_s3 + $0x68] sm:$0xff] }
 0x36a   :  { %v778_v33 = vpop.f32.mrf.mxu1  ;;  %v819_v34 = vpop.f32.mrf.mxu0  ;;  %v969_v30 = vld [vmem:[%s6201_s3 + $0x448] sm:$0xff] }
 0x36b   :  { %v779_v35 = vadd.f32 %v778_v33, %v409_v27  ;;  %v820_v36 = vadd.f32 %v819_v34, %v417_v28  ;;  %v824_v37 = vmax.f32 %v777_v31, 0.0  ;;  %v826_v38 = vmax.f32 %v818_v32, 0.0  ;;  %v841_v28 = vld [vmem:[%s6201_s3 + $0x48] sm:$0xff] }
 0x36c   :  { %v780_v39 = vpop.f32.mrf.mxu1  ;;  %v821_v41 = vpop.f32.mrf.mxu0  ;;  %v973_v31 = vld [vmem:[%s6201_s3 + $0x468] sm:$0xff]  ;;  %v3855_v34 = vcombine.high %v841_v28, %v845_v29 }
 0x36d   :  { %v825_v42 = vmax.f32 %v779_v35, 0.0  ;;  %v827_v43 = vmax.f32 %v820_v36, 0.0  ;;  %v5203_v52 = vpack.c.bf16 %v824_v37, %v824_v37  ;;  %v5205_v53 = vpack.c.bf16 %v826_v38, %v826_v38  ;;  %v833_v36 = vld [vmem:[%s6201_s3 + $0x8] sm:$0xff] }
 0x36e   :  { %v781_v45 = vpop.f32.mrf.mxu1  ;;  %v822_v46 = vpop.f32.mrf.mxu0  ;;  %v3983_v35 = vcombine.high %v969_v30, %v973_v31  ;;  %v837_v37 = vld [vmem:[%s6201_s3 + $0x28] sm:$0xff]  ;;  %v3854_v41 = vcombine.low %v841_v28, %v845_v29 }
 0x36f   :  { %v5199_v50 = vpack.c.bf16 %v825_v42, %v825_v42  ;;  %v5201_v51 = vpack.c.bf16 %v827_v43, %v827_v43  ;;  %v961_v38 = vld [vmem:[%s6201_s3 + $0x408] sm:$0xff]  ;;  %v3982_v42 = vcombine.low %v969_v30, %v973_v31  ;;  %v3847_v43 = vcombine.high %v833_v36, %v837_v37 }
 0x370   :  { %v965_v39 = vld [vmem:[%s6201_s3 + $0x428] sm:$0xff]  ;;  %v3846_v49 = vcombine.low %v833_v36, %v837_v37 }
 0x371   :  { %2442 = vmatprep.mubr.bf16.mxu1 %v5199_v50  ;;  %2483 = vmatprep.mubr.bf16.mxu0 %v5201_v51  ;;  %v3975_v44 = vcombine.high %v961_v38, %v965_v39  ;;  %v953_v45 = vld [vmem:[%s6201_s3 + $0x3c8] sm:$0xff]  ;;  %v3974_v54 = vcombine.low %v961_v38, %v965_v39 }
 0x372   :  { %2443 = vmatmul.mubr.bf16.vlgmr.msra.gmra.mxu1 %v5203_v52  ;;  %2484 = vmatmul.mubr.bf16.vlgmr.msra.gmra.mxu0 %v5205_v53  ;;  %v957_v46 = vld [vmem:[%s6201_s3 + $0x3e8] sm:$0xff] }
 0x373   :  { %2493 = vmatpush1.bf16.msra.mxu1 %v3902_v20  ;;  %2534 = vmatpush1.bf16.msra.mxu0 %v4030_v3  ;;  %v853_v20 = vld [vmem:[%s6201_s3 + $0xa8] sm:$0xff] }
 0x374   :  { %2524 = vmatprep.mubr.bf16.mxu1 %v5199_v50  ;;  %2565 = vmatprep.mubr.bf16.mxu0 %v5201_v51  ;;  %v977_v3 = vld [vmem:[%s6201_s3 + $0x488] sm:$0xff]  ;;  %v3863_v26 = vcombine.high %v849_v19, %v853_v20  ;;  %v3862_v32 = vcombine.low %v849_v19, %v853_v20 }
 0x375   :  { %2494 = vmatprep.subr.bf16.mxu1 %v3895_v55  ;;  %2535 = vmatprep.subr.bf16.mxu0 %v4023_v56  ;;  %v3991_v27 = vcombine.high %v977_v3, %v981_v21  ;;  %v3990_v33 = vcombine.low %v977_v3, %v981_v21  ;;  %v3967_v55 = vcombine.high %v953_v45, %v957_v46  ;;  %v933_v13 = vld [vmem:[%s6201_s3 + $0x328] sm:$0xff] }
 0x376   :  { %v4095_v56 = vcombine.high %v1081_v47, %v1085_v48  ;;  %v1057_v14 = vld [vmem:[%s6201_s3 + $0x708] sm:$0xff] }
 0x377   :  { %2495 = vmatpush1.bf16.msra.mxu1 %v3894_v60  ;;  %2536 = vmatpush1.bf16.msra.mxu0 %v4022_v61  ;;  %v1077_v60 = vld [vmem:[%s6201_s3 + $0x7a8] sm:$0xff]  ;;  %v3966_v61 = vcombine.low %v953_v45, %v957_v46 }
 0x378   :  { %2496 = vmatprep.subr.bf16.mxu1 %v3887_v62  ;;  %2537 = vmatprep.subr.bf16.mxu0 %v4015_v63  ;;  %v4094_v62 = vcombine.low %v1081_v47, %v1085_v48  ;;  %v3959_v63 = vcombine.high %v945_v57, %v949_v58  ;;  %v4087_v0 = vcombine.high %v1073_v59, %v1077_v60  ;;  %v921_v20 = vld [vmem:[%s6201_s3 + $0x2c8] sm:$0xff] }
 0x379   :  { %v925_v3 = vld [vmem:[%s6201_s3 + $0x2e8] sm:$0xff] }
 0x37a   :  { %v1049_v21 = vld [vmem:[%s6201_s3 + $0x6c8] sm:$0xff] }
 0x37b   :  { %2497 = vmatpush1.bf16.msra.mxu1 %v3886_v7  ;;  %2538 = vmatpush1.bf16.msra.mxu0 %v4014_v8  ;;  %v1069_v7 = vld [vmem:[%s6201_s3 + $0x768] sm:$0xff]  ;;  %v3958_v8 = vcombine.low %v945_v57, %v949_v58  ;;  %v890_v58 = vld [vmem:[%s6201_s3 + $0x1d0] sm:$0xff] }
 0x37c   :  { %2498 = vmatprep.subr.bf16.mxu1 %v3879_v9  ;;  %2539 = vmatprep.subr.bf16.mxu0 %v4007_v10  ;;  %v4086_v9 = vcombine.low %v1073_v59, %v1077_v60  ;;  %v3951_v10 = vcombine.high %v937_v4, %v941_v5  ;;  %v4079_v11 = vcombine.high %v1065_v6, %v1069_v7  ;;  %v913_v29 = vld [vmem:[%s6201_s3 + $0x288] sm:$0xff]  ;;  %v894_v59 = vld [vmem:[%s6201_s3 + $0x1f0] sm:$0xff] }
 0x37d   :  { %v917_v30 = vld [vmem:[%s6201_s3 + $0x2a8] sm:$0xff]  ;;  %v1018_v60 = vld [vmem:[%s6201_s3 + $0x5d0] sm:$0xff] }
 0x37e   :  { %v1041_v31 = vld [vmem:[%s6201_s3 + $0x688] sm:$0xff] }
 0x37f   :  { %2499 = vmatpush1.bf16.msra.mxu1 %v3878_v15  ;;  %2540 = vmatpush1.bf16.msra.mxu0 %v4006_v16  ;;  %v1061_v15 = vld [vmem:[%s6201_s3 + $0x728] sm:$0xff]  ;;  %v3950_v16 = vcombine.low %v937_v4, %v941_v5  ;;  %v882_v5 = vld [vmem:[%s6201_s3 + $0x190] sm:$0xff] }
 0x380   :  { %2500 = vmatprep.subr.bf16.mxu1 %v3871_v17  ;;  %2541 = vmatprep.subr.bf16.mxu0 %v3999_v18  ;;  %v4078_v17 = vcombine.low %v1065_v6, %v1069_v7  ;;  %v3943_v18 = vcombine.high %v929_v12, %v933_v13  ;;  %v4071_v19 = vcombine.high %v1057_v14, %v1061_v15  ;;  %v905_v37 = vld [vmem:[%s6201_s3 + $0x248] sm:$0xff]  ;;  %v886_v6 = vld [vmem:[%s6201_s3 + $0x1b0] sm:$0xff] }
 0x381   :  { %v909_v38 = vld [vmem:[%s6201_s3 + $0x268] sm:$0xff]  ;;  %v1010_v7 = vld [vmem:[%s6201_s3 + $0x590] sm:$0xff] }
 0x382   :  { %v1033_v39 = vld [vmem:[%s6201_s3 + $0x648] sm:$0xff] }
 0x383   :  { %2501 = vmatpush1.bf16.msra.mxu1 %v3870_v23  ;;  %2542 = vmatpush1.bf16.msra.mxu0 %v3998_v25  ;;  %v1053_v23 = vld [vmem:[%s6201_s3 + $0x6e8] sm:$0xff]  ;;  %v3942_v25 = vcombine.low %v929_v12, %v933_v13  ;;  %v874_v13 = vld [vmem:[%s6201_s3 + $0x150] sm:$0xff] }
 0x384   :  { %2502 = vmatprep.subr.bf16.mxu1 %v3863_v26  ;;  %2543 = vmatprep.subr.bf16.mxu0 %v3991_v27  ;;  %v4070_v26 = vcombine.low %v1057_v14, %v1061_v15  ;;  %v3935_v27 = vcombine.high %v921_v20, %v925_v3  ;;  %v4063_v28 = vcombine.high %v1049_v21, %v1053_v23  ;;  %v897_v46 = vld [vmem:[%s6201_s3 + $0x208] sm:$0xff]  ;;  %v878_v14 = vld [vmem:[%s6201_s3 + $0x170] sm:$0xff] }
 0x385   :  { %v901_v47 = vld [vmem:[%s6201_s3 + $0x228] sm:$0xff]  ;;  %v1002_v15 = vld [vmem:[%s6201_s3 + $0x550] sm:$0xff] }
 0x386   :  { %v1025_v48 = vld [vmem:[%s6201_s3 + $0x608] sm:$0xff] }
 0x387   :  { %2503 = vmatpush1.bf16.msra.mxu1 %v3862_v32  ;;  %2544 = vmatpush1.bf16.msra.mxu0 %v3990_v33  ;;  %v1045_v32 = vld [vmem:[%s6201_s3 + $0x6a8] sm:$0xff]  ;;  %v3934_v33 = vcombine.low %v921_v20, %v925_v3  ;;  %v3889_v3 = vcombine.high %v874_v13, %v878_v14 }
 0x388   :  { %2504 = vmatprep.subr.bf16.mxu1 %v3855_v34  ;;  %2545 = vmatprep.subr.bf16.mxu0 %v3983_v35  ;;  %v4062_v34 = vcombine.low %v1049_v21, %v1053_v23  ;;  %v3927_v35 = vcombine.high %v913_v29, %v917_v30  ;;  %v4055_v36 = vcombine.high %v1041_v31, %v1045_v32  ;;  %v994_v21 = vld [vmem:[%s6201_s3 + $0x510] sm:$0xff] }
 0x38b   :  { %2505 = vmatpush1.bf16.msra.mxu1 %v3854_v41  ;;  %2546 = vmatpush1.bf16.msra.mxu0 %v3982_v42  ;;  %v1037_v41 = vld [vmem:[%s6201_s3 + $0x668] sm:$0xff]  ;;  %v3926_v42 = vcombine.low %v913_v29, %v917_v30 }
 0x38c   :  { %2506 = vmatprep.subr.bf16.mxu1 %v3847_v43  ;;  %2547 = vmatprep.subr.bf16.mxu0 %v3975_v44  ;;  %v4054_v43 = vcombine.low %v1041_v31, %v1045_v32  ;;  %v3919_v44 = vcombine.high %v905_v37, %v909_v38  ;;  %v4047_v45 = vcombine.high %v1033_v39, %v1037_v41  ;;  %v986_v31 = vld [vmem:[%s6201_s3 + $0x4d0] sm:$0xff] }
 0x38f   :  { %2507 = vmatpush1.bf16.msra.mxu1 %v3846_v49  ;;  %2548 = vmatpush1.bf16.msra.mxu0 %v3974_v54  ;;  %v1029_v49 = vld [vmem:[%s6201_s3 + $0x628] sm:$0xff]  ;;  %v3918_v54 = vcombine.low %v905_v37, %v909_v38 }
 0x390   :  { %2508 = vmatprep.subr.bf16.mxu1 %v3967_v55  ;;  %2549 = vmatprep.subr.bf16.mxu0 %v4095_v56  ;;  %v4046_v55 = vcombine.low %v1033_v39, %v1037_v41  ;;  %v3911_v56 = vcombine.high %v897_v46, %v901_v47  ;;  %v4039_v57 = vcombine.high %v1025_v48, %v1029_v49  ;;  %v978_v41 = vld [vmem:[%s6201_s3 + $0x490] sm:$0xff] }
 0x393   :  { %2509 = vmatpush2.bf16.msra.mxu1 %v3966_v61  ;;  %2550 = vmatpush2.bf16.msra.mxu0 %v4094_v62  ;;  %v1022_v61 = vld [vmem:[%s6201_s3 + $0x5f0] sm:$0xff]  ;;  %v3910_v62 = vcombine.low %v897_v46, %v901_v47 }
 0x394   :  { %2510 = vmatprep.subr.bf16.mxu1 %v3959_v63  ;;  %2551 = vmatprep.subr.bf16.mxu0 %v4087_v0  ;;  %v4038_v63 = vcombine.low %v1025_v48, %v1029_v49  ;;  %v3905_v0 = vcombine.high %v890_v58, %v894_v59  ;;  %v4033_v4 = vcombine.high %v1018_v60, %v1022_v61  ;;  %v970_v48 = vld [vmem:[%s6201_s3 + $0x450] sm:$0xff] }
 0x395   :  { %v974_v49 = vld [vmem:[%s6201_s3 + $0x470] sm:$0xff] }
 0x397   :  { %2511 = vmatpush2.bf16.msra.mxu1 %v3958_v8  ;;  %2552 = vmatpush2.bf16.msra.mxu0 %v4086_v9  ;;  %v1014_v8 = vld [vmem:[%s6201_s3 + $0x5b0] sm:$0xff]  ;;  %v3904_v9 = vcombine.low %v890_v58, %v894_v59 }
 0x398   :  { %2512 = vmatprep.subr.bf16.mxu1 %v3951_v10  ;;  %2553 = vmatprep.subr.bf16.mxu0 %v4079_v11  ;;  %v4032_v10 = vcombine.low %v1018_v60, %v1022_v61  ;;  %v3897_v11 = vcombine.high %v882_v5, %v886_v6  ;;  %v4025_v12 = vcombine.high %v1010_v7, %v1014_v8  ;;  %v962_v60 = vld [vmem:[%s6201_s3 + $0x410] sm:$0xff] }
 0x399   :  { %v4024_v20 = vcombine.low %v1010_v7, %v1014_v8  ;;  %v966_v61 = vld [vmem:[%s6201_s3 + $0x430] sm:$0xff] }
 0x39a   :  { %v1082_v7 = vld [vmem:[%s6201_s3 + $0x7d0] sm:$0xff] }
 0x39b   :  { %2513 = vmatpush2.bf16.msra.mxu1 %v3950_v16  ;;  %2554 = vmatpush2.bf16.msra.mxu0 %v4078_v17  ;;  %v1006_v16 = vld [vmem:[%s6201_s3 + $0x570] sm:$0xff]  ;;  %v3896_v17 = vcombine.low %v882_v5, %v886_v6  ;;  %v3984_v5 = vcombine.low %v970_v48, %v974_v49 }
 0x39c   :  { %2514 = vmatprep.subr.bf16.mxu1 %v3943_v18  ;;  %2555 = vmatprep.subr.bf16.mxu0 %v4071_v19  ;;  %v866_v18 = vld [vmem:[%s6201_s3 + $0x110] sm:$0xff]  ;;  %v4017_v23 = vcombine.high %v1002_v15, %v1006_v16  ;;  %v4016_v29 = vcombine.low %v1002_v15, %v1006_v16 }
 0x39d   :  { %v870_v19 = vld [vmem:[%s6201_s3 + $0x130] sm:$0xff] }
 0x39e   :  { %v3881_v30 = vcombine.high %v866_v18, %v870_v19  ;;  %v1086_v8 = vld [vmem:[%s6201_s3 + $0x7f0] sm:$0xff] }
 0x39f   :  { %2515 = vmatpush2.bf16.msra.mxu1 %v3942_v25  ;;  %2556 = vmatpush2.bf16.msra.mxu0 %v4070_v26  ;;  %v998_v25 = vld [vmem:[%s6201_s3 + $0x530] sm:$0xff]  ;;  %v3888_v26 = vcombine.low %v874_v13, %v878_v14  ;;  %v3976_v13 = vcombine.low %v962_v60, %v966_v61 }
 0x3a0   :  { %2516 = vmatprep.subr.bf16.mxu1 %v3935_v27  ;;  %2557 = vmatprep.subr.bf16.mxu0 %v4063_v28  ;;  %v858_v27 = vld [vmem:[%s6201_s3 + $0xd0] sm:$0xff]  ;;  %v4009_v32 = vcombine.high %v994_v21, %v998_v25  ;;  %v4008_v37 = vcombine.low %v994_v21, %v998_v25 }
 0x3a1   :  { %v862_v28 = vld [vmem:[%s6201_s3 + $0xf0] sm:$0xff] }
 0x3a2   :  { %v3873_v38 = vcombine.high %v858_v27, %v862_v28  ;;  %v1074_v15 = vld [vmem:[%s6201_s3 + $0x790] sm:$0xff] }
 0x3a3   :  { %2517 = vmatpush2.bf16.msra.mxu1 %v3934_v33  ;;  %2558 = vmatpush2.bf16.msra.mxu0 %v4062_v34  ;;  %v990_v33 = vld [vmem:[%s6201_s3 + $0x4f0] sm:$0xff]  ;;  %v3880_v34 = vcombine.low %v866_v18, %v870_v19 }
 0x3a4   :  { %2518 = vmatprep.subr.bf16.mxu1 %v3927_v35  ;;  %2559 = vmatprep.subr.bf16.mxu0 %v4055_v36  ;;  %v850_v35 = vld [vmem:[%s6201_s3 + $0x90] sm:$0xff]  ;;  %v4001_v39 = vcombine.high %v986_v31, %v990_v33  ;;  %v4000_v46 = vcombine.low %v986_v31, %v990_v33 }
 0x3a5   :  { %v854_v36 = vld [vmem:[%s6201_s3 + $0xb0] sm:$0xff] }
 0x3a6   :  { %v3865_v47 = vcombine.high %v850_v35, %v854_v36  ;;  %v1078_v16 = vld [vmem:[%s6201_s3 + $0x7b0] sm:$0xff] }
 0x3a7   :  { %2519 = vmatpush2.bf16.msra.mxu1 %v3926_v42  ;;  %2560 = vmatpush2.bf16.msra.mxu0 %v4054_v43  ;;  %v982_v42 = vld [vmem:[%s6201_s3 + $0x4b0] sm:$0xff]  ;;  %v3872_v43 = vcombine.low %v858_v27, %v862_v28 }
 0x3a8   :  { %2520 = vmatprep.subr.bf16.mxu1 %v3919_v44  ;;  %2561 = vmatprep.subr.bf16.mxu0 %v4047_v45  ;;  %v842_v44 = vld [vmem:[%s6201_s3 + $0x50] sm:$0xff]  ;;  %v3992_v58 = vcombine.low %v978_v41, %v982_v42 }
 0x3a9   :  { %v846_v45 = vld [vmem:[%s6201_s3 + $0x70] sm:$0xff] }
 0x3aa   :  { %v3857_v59 = vcombine.high %v842_v44, %v846_v45  ;;  %v938_v19 = vld [vmem:[%s6201_s3 + $0x350] sm:$0xff] }
 0x3ab   :  { %2521 = vmatpush2.bf16.msra.mxu1 %v3918_v54  ;;  %2562 = vmatpush2.bf16.msra.mxu0 %v4046_v55  ;;  %v3993_v54 = vcombine.high %v978_v41, %v982_v42  ;;  %v3864_v55 = vcombine.low %v850_v35, %v854_v36  ;;  %v1070_v25 = vld [vmem:[%s6201_s3 + $0x770] sm:$0xff] }
 0x3ac   :  { %2522 = vmatprep.subr.bf16.mxu1 %v3911_v56  ;;  %2563 = vmatprep.subr.bf16.mxu0 %v4039_v57  ;;  %v834_v56 = vld [vmem:[%s6201_s3 + $0x10] sm:$0xff] }
 0x3ad   :  { %v838_v57 = vld [vmem:[%s6201_s3 + $0x30] sm:$0xff] }
 0x3ae   :  { %v3849_v6 = vcombine.high %v834_v56, %v838_v57  ;;  %v930_v28 = vld [vmem:[%s6201_s3 + $0x310] sm:$0xff] }
 0x3af   :  { %2523 = vmatpush2.bf16.msra.mxu1 %v3910_v62  ;;  %2564 = vmatpush2.bf16.msra.mxu0 %v4038_v63  ;;  %v3985_v62 = vcombine.high %v970_v48, %v974_v49  ;;  %v3856_v63 = vcombine.low %v842_v44, %v846_v45  ;;  %v1062_v33 = vld [vmem:[%s6201_s3 + $0x730] sm:$0xff] }
 0x3b0   :  { %2574 = vmatprep.subr.bf16.mxu1 %v3905_v0  ;;  %2615 = vmatprep.subr.bf16.mxu0 %v4033_v4  ;;  %v954_v0 = vld [vmem:[%s6201_s3 + $0x3d0] sm:$0xff] }
 0x3b1   :  { %v958_v4 = vld [vmem:[%s6201_s3 + $0x3f0] sm:$0xff] }
 0x3b2   :  { %2525 = vmatmul.mubr.bf16.vlgmr.msra.gmra.mxu1 %v5203_v52  ;;  %2566 = vmatmul.mubr.bf16.vlgmr.msra.gmra.mxu0 %v5205_v53  ;;  %v3969_v14 = vcombine.high %v954_v0, %v958_v4  ;;  %v3968_v18 = vcombine.low %v954_v0, %v958_v4  ;;  %v922_v36 = vld [vmem:[%s6201_s3 + $0x2d0] sm:$0xff] }
 0x3b3   :  { %2575 = vmatpush1.bf16.msra.mxu1 %v3904_v9  ;;  %2606 = vmatprep.mubr.bf16.mxu1 %v5199_v50  ;;  %v3977_v9 = vcombine.high %v962_v60, %v966_v61  ;;  %v1050_v41 = vld [vmem:[%s6201_s3 + $0x6d0] sm:$0xff] }
 0x3b4   :  { %2616 = vmatpush1.bf16.msra.mxu0 %v4032_v10  ;;  %2647 = vmatprep.mubr.bf16.mxu0 %v5201_v51  ;;  %v3848_v10 = vcombine.low %v834_v56, %v838_v57  ;;  %v1054_v42 = vld [vmem:[%s6201_s3 + $0x6f0] sm:$0xff] }
 0x3b5   :  { %2576 = vmatprep.subr.bf16.mxu1 %v3897_v11  ;;  %2617 = vmatprep.subr.bf16.mxu0 %v4025_v12  ;;  %v946_v11 = vld [vmem:[%s6201_s3 + $0x390] sm:$0xff] }
 0x3b6   :  { %v950_v12 = vld [vmem:[%s6201_s3 + $0x3b0] sm:$0xff] }
 0x3b7   :  { %2577 = vmatpush1.bf16.msra.mxu1 %v3896_v17  ;;  %v4097_v17 = vcombine.high %v1082_v7, %v1086_v8  ;;  %v3961_v21 = vcombine.high %v946_v11, %v950_v12  ;;  %v3960_v27 = vcombine.low %v946_v11, %v950_v12  ;;  %v914_v45 = vld [vmem:[%s6201_s3 + $0x290] sm:$0xff]  ;;  %v891_v12 = vld [vmem:[%s6201_s3 + $0x1d8] sm:$0xff] }
 0x3b8   :  { %2618 = vmatpush1.bf16.msra.mxu0 %v4024_v20  ;;  %2578 = vmatprep.subr.bf16.mxu1 %v3889_v3  ;;  %v942_v20 = vld [vmem:[%s6201_s3 + $0x370] sm:$0xff]  ;;  %v4096_v3 = vcombine.low %v1082_v7, %v1086_v8 }
 0x3b9   :  { %2619 = vmatprep.subr.bf16.mxu0 %v4017_v23  ;;  %v1066_v23 = vld [vmem:[%s6201_s3 + $0x750] sm:$0xff]  ;;  %v3953_v31 = vcombine.high %v938_v19, %v942_v20  ;;  %v3952_v35 = vcombine.low %v938_v19, %v942_v20 }
 0x3ba   :  { %v1042_v49 = vld [vmem:[%s6201_s3 + $0x690] sm:$0xff] }
 0x3bb   :  { %2579 = vmatpush1.bf16.msra.mxu1 %v3888_v26  ;;  %v4089_v26 = vcombine.high %v1074_v15, %v1078_v16  ;;  %v906_v57 = vld [vmem:[%s6201_s3 + $0x250] sm:$0xff] }
 0x3bc   :  { %2620 = vmatpush1.bf16.msra.mxu0 %v4016_v29  ;;  %2580 = vmatprep.subr.bf16.mxu1 %v3881_v30  ;;  %v934_v29 = vld [vmem:[%s6201_s3 + $0x330] sm:$0xff]  ;;  %v4088_v30 = vcombine.low %v1074_v15, %v1078_v16  ;;  %v1019_v16 = vld [vmem:[%s6201_s3 + $0x5d8] sm:$0xff] }
 0x3bd   :  { %2621 = vmatprep.subr.bf16.mxu0 %v4009_v32  ;;  %v1058_v32 = vld [vmem:[%s6201_s3 + $0x710] sm:$0xff]  ;;  %v3944_v44 = vcombine.low %v930_v28, %v934_v29 }
 0x3be   :  { %v1034_v61 = vld [vmem:[%s6201_s3 + $0x650] sm:$0xff] }
 0x3bf   :  { %2581 = vmatpush1.bf16.msra.mxu1 %v3880_v34  ;;  %v4081_v34 = vcombine.high %v1066_v23, %v1070_v25  ;;  %v898_v4 = vld [vmem:[%s6201_s3 + $0x210] sm:$0xff] }
 0x3c0   :  { %2622 = vmatpush1.bf16.msra.mxu0 %v4008_v37  ;;  %2582 = vmatprep.subr.bf16.mxu1 %v3873_v38  ;;  %v926_v37 = vld [vmem:[%s6201_s3 + $0x2f0] sm:$0xff]  ;;  %v4080_v38 = vcombine.low %v1066_v23, %v1070_v25  ;;  %v887_v23 = vld [vmem:[%s6201_s3 + $0x1b8] sm:$0xff] }
 0x3c1   :  { %2623 = vmatprep.subr.bf16.mxu0 %v4001_v39  ;;  %v3945_v39 = vcombine.high %v930_v28, %v934_v29  ;;  %v3937_v48 = vcombine.high %v922_v36, %v926_v37  ;;  %v3936_v56 = vcombine.low %v922_v36, %v926_v37  ;;  %v1026_v8 = vld [vmem:[%s6201_s3 + $0x610] sm:$0xff] }
 0x3c3   :  { %2583 = vmatpush1.bf16.msra.mxu1 %v3872_v43  ;;  %v4073_v43 = vcombine.high %v1058_v32, %v1062_v33 }
 0x3c4   :  { %2624 = vmatpush1.bf16.msra.mxu0 %v4000_v46  ;;  %2584 = vmatprep.subr.bf16.mxu1 %v3865_v47  ;;  %v918_v46 = vld [vmem:[%s6201_s3 + $0x2b0] sm:$0xff]  ;;  %v4072_v47 = vcombine.low %v1058_v32, %v1062_v33  ;;  %v879_v32 = vld [vmem:[%s6201_s3 + $0x178] sm:$0xff] }
 0x3c5   :  { %2625 = vmatprep.subr.bf16.mxu0 %v3993_v54  ;;  %v1046_v54 = vld [vmem:[%s6201_s3 + $0x6b0] sm:$0xff]  ;;  %v3929_v60 = vcombine.high %v914_v45, %v918_v46  ;;  %v3928_v0 = vcombine.low %v914_v45, %v918_v46 }
 0x3c7   :  { %2585 = vmatpush1.bf16.msra.mxu1 %v3864_v55  ;;  %v4065_v55 = vcombine.high %v1050_v41, %v1054_v42 }
 0x3c8   :  { %2626 = vmatpush1.bf16.msra.mxu0 %v3992_v58  ;;  %2586 = vmatprep.subr.bf16.mxu1 %v3857_v59  ;;  %v910_v58 = vld [vmem:[%s6201_s3 + $0x270] sm:$0xff]  ;;  %v4064_v59 = vcombine.low %v1050_v41, %v1054_v42  ;;  %v867_v41 = vld [vmem:[%s6201_s3 + $0x118] sm:$0xff] }
 0x3c9   :  { %2627 = vmatprep.subr.bf16.mxu0 %v3985_v62  ;;  %v1038_v62 = vld [vmem:[%s6201_s3 + $0x670] sm:$0xff]  ;;  %v3921_v7 = vcombine.high %v906_v57, %v910_v58  ;;  %v3920_v11 = vcombine.low %v906_v57, %v910_v58  ;;  %v871_v42 = vld [vmem:[%s6201_s3 + $0x138] sm:$0xff] }
 0x3ca   :  { %v3883_v45 = vcombine.high %v867_v41, %v871_v42 }
 0x3cb   :  { %2587 = vmatpush1.bf16.msra.mxu1 %v3856_v63  ;;  %v4057_v63 = vcombine.high %v1042_v49, %v1046_v54 }
 0x3cc   :  { %2628 = vmatpush1.bf16.msra.mxu0 %v3984_v5  ;;  %2588 = vmatprep.subr.bf16.mxu1 %v3849_v6  ;;  %v902_v5 = vld [vmem:[%s6201_s3 + $0x230] sm:$0xff]  ;;  %v4056_v6 = vcombine.low %v1042_v49, %v1046_v54  ;;  %v987_v49 = vld [vmem:[%s6201_s3 + $0x4d8] sm:$0xff] }
 0x3cd   :  { %2629 = vmatprep.subr.bf16.mxu0 %v3977_v9  ;;  %v1030_v9 = vld [vmem:[%s6201_s3 + $0x630] sm:$0xff]  ;;  %v3913_v15 = vcombine.high %v898_v4, %v902_v5  ;;  %v3912_v19 = vcombine.low %v898_v4, %v902_v5  ;;  %v991_v54 = vld [vmem:[%s6201_s3 + $0x4f8] sm:$0xff] }
 0x3ce   :  { %v4040_v20 = vcombine.low %v1026_v8, %v1030_v9  ;;  %v4003_v58 = vcombine.high %v987_v49, %v991_v54 }
 0x3cf   :  { %2589 = vmatpush1.bf16.msra.mxu1 %v3848_v10  ;;  %v4049_v10 = vcombine.high %v1034_v61, %v1038_v62 }
 0x3d0   :  { %2630 = vmatpush1.bf16.msra.mxu0 %v3976_v13  ;;  %2590 = vmatprep.subr.bf16.mxu1 %v3969_v14  ;;  %v895_v13 = vld [vmem:[%s6201_s3 + $0x1f8] sm:$0xff]  ;;  %v4048_v14 = vcombine.low %v1034_v61, %v1038_v62 }
 0x3d1   :  { %2631 = vmatprep.subr.bf16.mxu0 %v4097_v17  ;;  %v1023_v17 = vld [vmem:[%s6201_s3 + $0x5f8] sm:$0xff]  ;;  %v3906_v28 = vcombine.low %v891_v12, %v895_v13 }
 0x3d2   :  { %v4035_v25 = vcombine.high %v1019_v16, %v1023_v17  ;;  %v4034_v29 = vcombine.low %v1019_v16, %v1023_v17  ;;  %v979_v61 = vld [vmem:[%s6201_s3 + $0x498] sm:$0xff] }
 0x3d3   :  { %2591 = vmatpush2.bf16.msra.mxu1 %v3968_v18  ;;  %v4041_v18 = vcombine.high %v1026_v8, %v1030_v9  ;;  %v983_v62 = vld [vmem:[%s6201_s3 + $0x4b8] sm:$0xff] }
 0x3d4   :  { %2632 = vmatpush2.bf16.msra.mxu0 %v4096_v3  ;;  %2592 = vmatprep.subr.bf16.mxu1 %v3961_v21  ;;  %v3907_v3 = vcombine.high %v891_v12, %v895_v13  ;;  %v883_v21 = vld [vmem:[%s6201_s3 + $0x198] sm:$0xff]  ;;  %v3995_v5 = vcombine.high %v979_v61, %v983_v62 }
 0x3d5   :  { %2633 = vmatprep.subr.bf16.mxu0 %v4089_v26  ;;  %v1011_v26 = vld [vmem:[%s6201_s3 + $0x598] sm:$0xff]  ;;  %v3898_v36 = vcombine.low %v883_v21, %v887_v23 }
 0x3d6   :  { %v971_v8 = vld [vmem:[%s6201_s3 + $0x458] sm:$0xff] }
 0x3d7   :  { %2593 = vmatpush2.bf16.msra.mxu1 %v3960_v27  ;;  %v1015_v27 = vld [vmem:[%s6201_s3 + $0x5b8] sm:$0xff] }
 0x3d8   :  { %2634 = vmatpush2.bf16.msra.mxu0 %v4088_v30  ;;  %2594 = vmatprep.subr.bf16.mxu1 %v3953_v31  ;;  %v3899_v30 = vcombine.high %v883_v21, %v887_v23  ;;  %v875_v31 = vld [vmem:[%s6201_s3 + $0x158] sm:$0xff]  ;;  %v4027_v33 = vcombine.high %v1011_v26, %v1015_v27  ;;  %v4026_v37 = vcombine.low %v1011_v26, %v1015_v27 }
 0x3d9   :  { %2635 = vmatprep.subr.bf16.mxu0 %v4081_v34  ;;  %v1003_v34 = vld [vmem:[%s6201_s3 + $0x558] sm:$0xff] }
 0x3da   :  { %v975_v9 = vld [vmem:[%s6201_s3 + $0x478] sm:$0xff] }
 0x3db   :  { %2595 = vmatpush2.bf16.msra.mxu1 %v3952_v35  ;;  %v1007_v35 = vld [vmem:[%s6201_s3 + $0x578] sm:$0xff]  ;;  %v3987_v13 = vcombine.high %v971_v8, %v975_v9 }
 0x3dc   :  { %2636 = vmatpush2.bf16.msra.mxu0 %v4080_v38  ;;  %2596 = vmatprep.subr.bf16.mxu1 %v3945_v39  ;;  %v3891_v38 = vcombine.high %v875_v31, %v879_v32  ;;  %v4019_v39 = vcombine.high %v1003_v34, %v1007_v35  ;;  %v963_v16 = vld [vmem:[%s6201_s3 + $0x418] sm:$0xff] }
 0x3dd   :  { %2637 = vmatprep.subr.bf16.mxu0 %v4073_v43  ;;  %v999_v43 = vld [vmem:[%s6201_s3 + $0x538] sm:$0xff] }
 0x3de   :  { %v967_v17 = vld [vmem:[%s6201_s3 + $0x438] sm:$0xff] }
 0x3df   :  { %2597 = vmatpush2.bf16.msra.mxu1 %v3944_v44  ;;  %v4018_v44 = vcombine.low %v1003_v34, %v1007_v35  ;;  %v955_v21 = vld [vmem:[%s6201_s3 + $0x3d8] sm:$0xff] }
 0x3e0   :  { %2638 = vmatpush2.bf16.msra.mxu0 %v4072_v47  ;;  %2598 = vmatprep.subr.bf16.mxu1 %v3937_v48  ;;  %v859_v47 = vld [vmem:[%s6201_s3 + $0xd8] sm:$0xff] }
 0x3e1   :  { %2639 = vmatprep.subr.bf16.mxu0 %v4065_v55  ;;  %v863_v48 = vld [vmem:[%s6201_s3 + $0xf8] sm:$0xff]  ;;  %v3882_v55 = vcombine.low %v867_v41, %v871_v42 }
 0x3e2   :  { %v3875_v57 = vcombine.high %v859_v47, %v863_v48  ;;  %v959_v23 = vld [vmem:[%s6201_s3 + $0x3f8] sm:$0xff] }
 0x3e3   :  { %2599 = vmatpush2.bf16.msra.mxu1 %v3936_v56  ;;  %v1087_v26 = vld [vmem:[%s6201_s3 + $0x7f8] sm:$0xff]  ;;  %v3970_v35 = vcombine.low %v955_v21, %v959_v23 }
 0x3e4   :  { %2640 = vmatpush2.bf16.msra.mxu0 %v4064_v59  ;;  %2600 = vmatprep.subr.bf16.mxu1 %v3929_v60  ;;  %v851_v59 = vld [vmem:[%s6201_s3 + $0x98] sm:$0xff] }
 0x3e5   :  { %2641 = vmatprep.subr.bf16.mxu0 %v4057_v63  ;;  %v855_v60 = vld [vmem:[%s6201_s3 + $0xb8] sm:$0xff]  ;;  %v3874_v63 = vcombine.low %v859_v47, %v863_v48 }
 0x3e6   :  { %v3867_v4 = vcombine.high %v851_v59, %v855_v60  ;;  %v1079_v34 = vld [vmem:[%s6201_s3 + $0x7b8] sm:$0xff] }
 0x3e7   :  { %2601 = vmatpush2.bf16.msra.mxu1 %v3928_v0  ;;  %v4002_v0 = vcombine.low %v987_v49, %v991_v54  ;;  %v943_v41 = vld [vmem:[%s6201_s3 + $0x378] sm:$0xff] }
 0x3e8   :  { %2642 = vmatpush2.bf16.msra.mxu0 %v4056_v6  ;;  %2602 = vmatprep.subr.bf16.mxu1 %v3921_v7  ;;  %v843_v6 = vld [vmem:[%s6201_s3 + $0x58] sm:$0xff] }
 0x3e9   :  { %2643 = vmatprep.subr.bf16.mxu0 %v4049_v10  ;;  %v847_v7 = vld [vmem:[%s6201_s3 + $0x78] sm:$0xff]  ;;  %v3866_v10 = vcombine.low %v851_v59, %v855_v60 }
 0x3ea   :  { %v3859_v12 = vcombine.high %v843_v6, %v847_v7  ;;  %v1067_v42 = vld [vmem:[%s6201_s3 + $0x758] sm:$0xff] }
 0x3eb   :  { %2603 = vmatpush2.bf16.msra.mxu1 %v3920_v11  ;;  %v3994_v11 = vcombine.low %v979_v61, %v983_v62  ;;  %v935_v47 = vld [vmem:[%s6201_s3 + $0x338] sm:$0xff] }
 0x3ec   :  { %2644 = vmatpush2.bf16.msra.mxu0 %v4048_v14  ;;  %2604 = vmatprep.subr.bf16.mxu1 %v3913_v15  ;;  %v835_v14 = vld [vmem:[%s6201_s3 + $0x18] sm:$0xff] }
 0x3ed   :  { %2645 = vmatprep.subr.bf16.mxu0 %v4041_v18  ;;  %v839_v15 = vld [vmem:[%s6201_s3 + $0x38] sm:$0xff]  ;;  %v3858_v18 = vcombine.low %v843_v6, %v847_v7 }
 0x3ee   :  { %v3850_v27 = vcombine.low %v835_v14, %v839_v15  ;;  %v1059_v48 = vld [vmem:[%s6201_s3 + $0x718] sm:$0xff] }
 0x3ef   :  { %2605 = vmatpush2.bf16.msra.mxu1 %v3912_v19  ;;  %v3986_v19 = vcombine.low %v971_v8, %v975_v9  ;;  %v1063_v49 = vld [vmem:[%s6201_s3 + $0x738] sm:$0xff] }
 0x3f0   :  { %2646 = vmatpush2.bf16.msra.mxu0 %v4040_v20  ;;  %2656 = vmatprep.subr.bf16.mxu1 %v3907_v3  ;;  %v3851_v20 = vcombine.high %v835_v14, %v839_v15  ;;  %v3979_v3 = vcombine.high %v963_v16, %v967_v17  ;;  %v927_v59 = vld [vmem:[%s6201_s3 + $0x2f8] sm:$0xff] }
 0x3f1   :  { %2697 = vmatprep.subr.bf16.mxu0 %v4035_v25  ;;  %v1083_v25 = vld [vmem:[%s6201_s3 + $0x7d8] sm:$0xff] }
 0x3f2   :  { %2607 = vmatmul.mubr.bf16.vlgmr.msra.gmra.mxu1 %v5203_v52  ;;  %v1051_v60 = vld [vmem:[%s6201_s3 + $0x6d8] sm:$0xff] }
 0x3f3   :  { %2648 = vmatmul.mubr.bf16.vlgmr.msra.gmra.mxu0 %v5205_v53  ;;  %2657 = vmatpush1.bf16.msra.mxu1 %v3906_v28  ;;  %v3978_v28 = vcombine.low %v963_v16, %v967_v17  ;;  %v1055_v61 = vld [vmem:[%s6201_s3 + $0x6f8] sm:$0xff] }
 0x3f4   :  { %2688 = vmatprep.mubr.bf16.mxu1 %v5199_v50  ;;  %2698 = vmatpush1.bf16.msra.mxu0 %v4034_v29  ;;  %v995_v50 = vld [vmem:[%s6201_s3 + $0x518] sm:$0xff]  ;;  %v3971_v29 = vcombine.high %v955_v21, %v959_v23 }
 0x3f5   :  { %2729 = vmatprep.mubr.bf16.mxu0 %v5201_v51  ;;  %2658 = vmatprep.subr.bf16.mxu1 %v3899_v30  ;;  %v3890_v51 = vcombine.low %v875_v31, %v879_v32  ;;  %v4011_v46 = vcombine.high %v995_v50, %v999_v43  ;;  %v4010_v56 = vcombine.low %v995_v50, %v999_v43  ;;  %v947_v31 = vld [vmem:[%s6201_s3 + $0x398] sm:$0xff] }
 0x3f6   :  { %2699 = vmatprep.subr.bf16.mxu0 %v4027_v33  ;;  %v4099_v30 = vcombine.high %v1083_v25, %v1087_v26  ;;  %v951_v32 = vld [vmem:[%s6201_s3 + $0x3b8] sm:$0xff] }
 0x3f7   :  { %2659 = vmatpush1.bf16.msra.mxu1 %v3898_v36  ;;  %v1075_v33 = vld [vmem:[%s6201_s3 + $0x798] sm:$0xff]  ;;  %v4098_v36 = vcombine.low %v1083_v25, %v1087_v26  ;;  %v3962_v43 = vcombine.low %v947_v31, %v951_v32 }
 0x3f8   :  { %2700 = vmatpush1.bf16.msra.mxu0 %v4026_v37  ;;  %2660 = vmatprep.subr.bf16.mxu1 %v3891_v38  ;;  %v3963_v37 = vcombine.high %v947_v31, %v951_v32  ;;  %v4091_v38 = vcombine.high %v1075_v33, %v1079_v34  ;;  %v1071_v50 = vld [vmem:[%s6201_s3 + $0x778] sm:$0xff] }
 0x3f9   :  { %2701 = vmatprep.subr.bf16.mxu0 %v4019_v39  ;;  %v939_v39 = vld [vmem:[%s6201_s3 + $0x358] sm:$0xff] }
 0x3fa   :  { %v3954_v54 = vcombine.low %v939_v39, %v943_v41  ;;  %v919_v6 = vld [vmem:[%s6201_s3 + $0x2b8] sm:$0xff] }
 0x3fb   :  { %2661 = vmatpush1.bf16.msra.mxu1 %v3890_v51  ;;  %v4090_v51 = vcombine.low %v1075_v33, %v1079_v34  ;;  %v1043_v7 = vld [vmem:[%s6201_s3 + $0x698] sm:$0xff] }
 0x3fc   :  { %2702 = vmatpush1.bf16.msra.mxu0 %v4018_v44  ;;  %2662 = vmatprep.subr.bf16.mxu1 %v3883_v45  ;;  %v3955_v44 = vcombine.high %v939_v39, %v943_v41  ;;  %v4083_v45 = vcombine.high %v1067_v42, %v1071_v50  ;;  %v1047_v8 = vld [vmem:[%s6201_s3 + $0x6b8] sm:$0xff]  ;;  %v4381_v39 = vld [vmem:[%s6203_s5 + $0x164] ss:$8 sps:$4 sm:$0xff]  }
 0x3fd   :  { %2703 = vmatprep.subr.bf16.mxu0 %v4011_v46  ;;  %v931_v46 = vld [vmem:[%s6201_s3 + $0x318] sm:$0xff] }
 0x3fe   :  { %v3946_v62 = vcombine.low %v931_v46, %v935_v47  ;;  %v911_v14 = vld [vmem:[%s6201_s3 + $0x278] sm:$0xff] }
 0x3ff   :  { %2663 = vmatpush1.bf16.msra.mxu1 %v3882_v55  ;;  %v4082_v55 = vcombine.low %v1067_v42, %v1071_v50  ;;  %v1035_v15 = vld [vmem:[%s6201_s3 + $0x658] sm:$0xff]  ;;  %v4364_v50 = vld [vmem:[%s6203_s5 + $0x60] ss:$8 sps:$4 sm:$0xff]  }
 0x400   :  { %2704 = vmatpush1.bf16.msra.mxu0 %v4010_v56  ;;  %2664 = vmatprep.subr.bf16.mxu1 %v3875_v57  ;;  %v3947_v56 = vcombine.high %v931_v46, %v935_v47  ;;  %v4075_v57 = vcombine.high %v1059_v48, %v1063_v49  ;;  %v1039_v16 = vld [vmem:[%s6201_s3 + $0x678] sm:$0xff] }
 0x401   :  { %2705 = vmatprep.subr.bf16.mxu0 %v4003_v58  ;;  %v923_v58 = vld [vmem:[%s6201_s3 + $0x2d8] sm:$0xff] }
 0x402   :  { %v3938_v9 = vcombine.low %v923_v58, %v927_v59  ;;  %v903_v21 = vld [vmem:[%s6201_s3 + $0x238] sm:$0xff] }
 0x403   :  { %2665 = vmatpush1.bf16.msra.mxu1 %v3874_v63  ;;  %v4074_v63 = vcombine.low %v1059_v48, %v1063_v49  ;;  %v1027_v23 = vld [vmem:[%s6201_s3 + $0x618] sm:$0xff] }
 0x404   :  { %2706 = vmatpush1.bf16.msra.mxu0 %v4002_v0  ;;  %2666 = vmatprep.subr.bf16.mxu1 %v3867_v4  ;;  %v3939_v0 = vcombine.high %v923_v58, %v927_v59  ;;  %v4067_v4 = vcombine.high %v1051_v60, %v1055_v61  ;;  %v1031_v25 = vld [vmem:[%s6201_s3 + $0x638] sm:$0xff]  ;;  %v4393_v59 = vld [vmem:[%s6203_s5 + $0x144] ss:$8 sps:$4 sm:$0xff]  }
 0x405   :  { %2707 = vmatprep.subr.bf16.mxu0 %v3995_v5  ;;  %v915_v5 = vld [vmem:[%s6201_s3 + $0x298] sm:$0xff]  ;;  %v4042_v31 = vcombine.low %v1027_v23, %v1031_v25 }
 0x406   :  { %v3930_v17 = vcombine.low %v915_v5, %v919_v6  ;;  %v4363_v32 = vld [vmem:[%s6203_s5 + $0x74] ss:$8 sps:$4 sm:$0xff]   ;;  %v4361_v34 = vld [vmem:[%s6203_s5 + $0x70] ss:$8 sps:$4 sm:$0xff]  }
 0x407   :  { %2667 = vmatpush1.bf16.msra.mxu1 %v3866_v10  ;;  %v4066_v10 = vcombine.low %v1051_v60, %v1055_v61  ;;  %v4375_v33 = vld [vmem:[%s6203_s5 + $0x174] ss:$8 sps:$4 sm:$0xff]   ;;  %v4367_v49 = vld [vmem:[%s6203_s5 + $0x50] ss:$8 sps:$4 sm:$0xff]   ;;  %v4370_v61 = vld [vmem:[%s6203_s5 + $0x40] ss:$8 sps:$4 sm:$0xff]  }
 0x408   :  { %2708 = vmatpush1.bf16.msra.mxu0 %v3994_v11  ;;  %2668 = vmatprep.subr.bf16.mxu1 %v3859_v12  ;;  %v3931_v11 = vcombine.high %v915_v5, %v919_v6  ;;  %v4059_v12 = vcombine.high %v1043_v7, %v1047_v8  ;;  %v4384_v5 = vld [vmem:[%s6203_s5 + $0x24] ss:$8 sps:$4 sm:$0xff]   ;;  %v4397_v6 = vld [vmem:[%s6203_s5 + $0x130] ss:$8 sps:$4 sm:$0xff]  }
 0x409   :  { %2709 = vmatprep.subr.bf16.mxu0 %v3987_v13  ;;  %v907_v13 = vld [vmem:[%s6201_s3 + $0x258] sm:$0xff] }
 0x40a   :  { %v3922_v26 = vcombine.low %v907_v13, %v911_v14 }
 0x40b   :  { %2669 = vmatpush1.bf16.msra.mxu1 %v3858_v18  ;;  %v4058_v18 = vcombine.low %v1043_v7, %v1047_v8  ;;  %v4405_v7 = vld [vmem:[%s6203_s5 + $0x124] ss:$8 sps:$4 sm:$0xff]   ;;  %v4382_v8 = vld [vmem:[%s6203_s5 + $0x20] ss:$8 sps:$4 sm:$0xff]  }
 0x40c   :  { %2710 = vmatpush1.bf16.msra.mxu0 %v3986_v19  ;;  %2670 = vmatprep.subr.bf16.mxu1 %v3851_v20  ;;  %v3923_v19 = vcombine.high %v907_v13, %v911_v14  ;;  %v4051_v20 = vcombine.high %v1035_v15, %v1039_v16  ;;  %v4396_v13 = vld [vmem:[%s6203_s5 + $0x4] ss:$8 sps:$4 sm:$0xff]   ;;  %v4409_v14 = vld [vmem:[%s6203_s5 + $0x110] ss:$8 sps:$4 sm:$0xff]  }
 0x40d   :  { %2711 = vmatprep.subr.bf16.mxu0 %v3979_v3  ;;  %v899_v3 = vld [vmem:[%s6201_s3 + $0x218] sm:$0xff] }
 0x40f   :  { %2671 = vmatpush1.bf16.msra.mxu1 %v3850_v27  ;;  %v4050_v27 = vcombine.low %v1035_v15, %v1039_v16  ;;  %v4417_v15 = vld [vmem:[%s6203_s5 + $0x104] ss:$8 sps:$4 sm:$0xff]   ;;  %v4394_v16 = vld [vmem:[%s6203_s5] ss:$8 sps:$4 sm:$0xff]  }
 0x410   :  { %2712 = vmatpush1.bf16.msra.mxu0 %v3978_v28  ;;  %2672 = vmatprep.subr.bf16.mxu1 %v3971_v29  ;;  %v3915_v28 = vcombine.high %v899_v3, %v903_v21  ;;  %v4043_v29 = vcombine.high %v1027_v23, %v1031_v25  ;;  %v4429_v23 = vld [vmem:[%s6203_s5 + $0x1e4] ss:$8 sps:$4 sm:$0xff]   ;;  %v4406_v25 = vld [vmem:[%s6203_s5 + $0xe0] ss:$8 sps:$4 sm:$0xff]  }
 0x411   :  { %2713 = vmatprep.subr.bf16.mxu0 %v4099_v30  ;;  %v3914_v30 = vcombine.low %v899_v3, %v903_v21  ;;  %v4408_v3 = vld [vmem:[%s6203_s5 + $0xe4] ss:$8 sps:$4 sm:$0xff]   ;;  %v4421_v21 = vld [vmem:[%s6203_s5 + $0x1f0] ss:$8 sps:$4 sm:$0xff]  }
 0x413   :  { %2673 = vmatpush2.bf16.msra.mxu1 %v3970_v35  ;;  %v5785_v35 = vld [vmem:[%s6204_s4] sm:$0xff] }
 0x414   :  { %2714 = vmatpush2.bf16.msra.mxu0 %v4098_v36  ;;  %2674 = vmatprep.subr.bf16.mxu1 %v3963_v37  ;;  %v4366_v36 = vld [vmem:[%s6203_s5 + $0x64] ss:$8 sps:$4 sm:$0xff]   ;;  %v4373_v37 = vld [vmem:[%s6203_s5 + $0x170] ss:$8 sps:$4 sm:$0xff]  }
 0x415   :  { %2715 = vmatprep.subr.bf16.mxu0 %v4091_v38  ;;  %v1097_v38 = vrot.slane %v5785_v35, %v5178_v24 }
 0x417   :  { %2675 = vmatpush2.bf16.msra.mxu1 %v3962_v43 }
 0x418   :  { %2716 = vmatpush2.bf16.msra.mxu0 %v4090_v51  ;;  %2676 = vmatprep.subr.bf16.mxu1 %v3955_v44  ;;  %v4369_v44 = vld [vmem:[%s6203_s5 + $0x54] ss:$8 sps:$4 sm:$0xff]  }
 0x419   :  { %2717 = vmatprep.subr.bf16.mxu0 %v4083_v45 }
 0x41b   :  { %2677 = vmatpush2.bf16.msra.mxu1 %v3954_v54 }
 0x41c   :  { %2718 = vmatpush2.bf16.msra.mxu0 %v4082_v55  ;;  %2678 = vmatprep.subr.bf16.mxu1 %v3947_v56  ;;  %v4372_v56 = vld [vmem:[%s6203_s5 + $0x44] ss:$8 sps:$4 sm:$0xff]  }
 0x41d   :  { %2719 = vmatprep.subr.bf16.mxu0 %v4075_v57  ;;  %v4385_v57 = vld [vmem:[%s6203_s5 + $0x150] ss:$8 sps:$4 sm:$0xff]  }
 0x41f   :  { %2679 = vmatpush2.bf16.msra.mxu1 %v3946_v62  ;;  %v4378_v62 = vld [vmem:[%s6203_s5 + $0x34] ss:$8 sps:$4 sm:$0xff]  }
 0x420   :  { %2720 = vmatpush2.bf16.msra.mxu0 %v4074_v63  ;;  %2680 = vmatprep.subr.bf16.mxu1 %v3939_v0  ;;  %v4391_v63 = vld [vmem:[%s6203_s5 + $0x140] ss:$8 sps:$4 sm:$0xff]   ;;  %v4399_v0 = vld [vmem:[%s6203_s5 + $0x134] ss:$8 sps:$4 sm:$0xff]  }
 0x421   :  { %2721 = vmatprep.subr.bf16.mxu0 %v4067_v4  ;;  %v4376_v4 = vld [vmem:[%s6203_s5 + $0x30] ss:$8 sps:$4 sm:$0xff]  }
 0x423   :  { %2681 = vmatpush2.bf16.msra.mxu1 %v3938_v9  ;;  %v4390_v9 = vld [vmem:[%s6203_s5 + $0x14] ss:$8 sps:$4 sm:$0xff]  }
 0x424   :  { %2722 = vmatpush2.bf16.msra.mxu0 %v4066_v10  ;;  %2682 = vmatprep.subr.bf16.mxu1 %v3931_v11  ;;  %v4403_v10 = vld [vmem:[%s6203_s5 + $0x120] ss:$8 sps:$4 sm:$0xff]   ;;  %v4411_v11 = vld [vmem:[%s6203_s5 + $0x114] ss:$8 sps:$4 sm:$0xff]  }
 0x425   :  { %2723 = vmatprep.subr.bf16.mxu0 %v4059_v12  ;;  %v4388_v12 = vld [vmem:[%s6203_s5 + $0x10] ss:$8 sps:$4 sm:$0xff]  }
 0x427   :  { %2683 = vmatpush2.bf16.msra.mxu1 %v3930_v17  ;;  %v4402_v17 = vld [vmem:[%s6203_s5 + $0xf4] ss:$8 sps:$4 sm:$0xff]  }
 0x428   :  { %2724 = vmatpush2.bf16.msra.mxu0 %v4058_v18  ;;  %2684 = vmatprep.subr.bf16.mxu1 %v3923_v19  ;;  %v4415_v18 = vld [vmem:[%s6203_s5 + $0x100] ss:$8 sps:$4 sm:$0xff]   ;;  %v4423_v19 = vld [vmem:[%s6203_s5 + $0x1f4] ss:$8 sps:$4 sm:$0xff]  }
 0x429   :  { %2725 = vmatprep.subr.bf16.mxu0 %v4051_v20  ;;  %v4400_v20 = vld [vmem:[%s6203_s5 + $0xf0] ss:$8 sps:$4 sm:$0xff]  }
 0x42b   :  { %2685 = vmatpush2.bf16.msra.mxu1 %v3922_v26  ;;  %v4414_v26 = vld [vmem:[%s6203_s5 + $0xd4] ss:$8 sps:$4 sm:$0xff]  }
 0x42c   :  { %2726 = vmatpush2.bf16.msra.mxu0 %v4050_v27  ;;  %2686 = vmatprep.subr.bf16.mxu1 %v3915_v28  ;;  %v4427_v27 = vld [vmem:[%s6203_s5 + $0x1e0] ss:$8 sps:$4 sm:$0xff]   ;;  %v4435_v28 = vld [vmem:[%s6203_s5 + $0x1d4] ss:$8 sps:$4 sm:$0xff]  }
 0x42d   :  { %2727 = vmatprep.subr.bf16.mxu0 %v4043_v29  ;;  %v4412_v29 = vld [vmem:[%s6203_s5 + $0xd0] ss:$8 sps:$4 sm:$0xff]  }
 0x42f   :  { %2687 = vmatpush2.bf16.msra.mxu1 %v3914_v30  ;;  %v4420_v30 = vld [vmem:[%s6203_s5 + $0xc4] ss:$8 sps:$4 sm:$0xff]  }
 0x430   :  { %2728 = vmatpush2.bf16.msra.mxu0 %v4042_v31  ;;  %3534 = vmatprep.subr.bf16.mxu1 %v4363_v32  ;;  %v4433_v31 = vld [vmem:[%s6203_s5 + $0x1d0] ss:$8 sps:$4 sm:$0xff]   ;;  %v4441_v32 = vld [vmem:[%s6203_s5 + $0x1c4] ss:$8 sps:$4 sm:$0xff]  }
 0x431   :  { %3575 = vmatprep.subr.bf16.mxu0 %v4375_v33  ;;  %v4418_v33 = vld [vmem:[%s6203_s5 + $0xc0] ss:$8 sps:$4 sm:$0xff]  }
 0x432   :  { %2689 = vmatmul.mubr.bf16.vlgmr.msra.gmra.mxu1 %v5203_v52  ;;  %v5799_v41 = vpop.f32.mrf.mxu1  ;;  %v5801_v42 = vpop.f32.mrf.mxu0  ;;  %v4379_v52 = vld [vmem:[%s6203_s5 + $0x160] ss:$8 sps:$4 sm:$0xff]  }
 0x433   :  { %2730 = vmatmul.mubr.bf16.vlgmr.msra.gmra.mxu0 %v5205_v53  ;;  %3535 = vmatpush1.bf16.msra.mxu1 %v4361_v34  ;;  %v4387_v53 = vld [vmem:[%s6203_s5 + $0x154] ss:$8 sps:$4 sm:$0xff]  }
 0x434   :  { %v2446_v43 = vpop.f32.mrf.mxu1  ;;  %v2487_v51 = vpop.f32.mrf.mxu0  ;;  %3536 = vmatprep.subr.bf16.mxu1 %v4366_v36  ;;  %3576 = vmatpush1.bf16.msra.mxu0 %v4373_v37  ;;  %v4426_v34 = vld [vmem:[%s6203_s5 + $0xb4] ss:$8 sps:$4 sm:$0xff]   ;;  %v4439_v36 = vld [vmem:[%s6203_s5 + $0x1c0] ss:$8 sps:$4 sm:$0xff]  }
 0x435   :  { %v2447_v45 = vadd.f32 %v2446_v43, %v1097_v38  ;;  %3577 = vmatprep.subr.bf16.mxu0 %v4381_v39  ;;  %v4447_v37 = vld [vmem:[%s6203_s5 + $0x1b4] ss:$8 sps:$4 sm:$0xff]   ;;  %v4424_v38 = vld [vmem:[%s6203_s5 + $0xb0] ss:$8 sps:$4 sm:$0xff]   ;;  %v1093_v39 = vrot.slane %v5785_v35, %v5171_v22 }
 0x436   :  { %v2448_v46 = vpop.f32.mrf.mxu1  ;;  %v2489_v47 = vpop.f32.mrf.mxu0  ;;  %v4445_v43 = vld [vmem:[%s6203_s5 + $0x1b0] ss:$8 sps:$4 sm:$0xff]  }
 0x437   :  { %v2488_v48 = vadd.f32 %v2487_v51, %v2447_v45  ;;  %3537 = vmatpush1.bf16.msra.mxu1 %v4364_v50  ;;  %v4432_v50 = vld [vmem:[%s6203_s5 + $0xa4] ss:$8 sps:$4 sm:$0xff]   ;;  %v4438_v45 = vld [vmem:[%s6203_s5 + $0x94] ss:$8 sps:$4 sm:$0xff]  }
 0x438   :  { %v2449_v54 = vpop.f32.mrf.mxu1  ;;  %v2490_v55 = vpop.f32.mrf.mxu0  ;;  %3538 = vmatprep.subr.bf16.mxu1 %v4369_v44  ;;  %3578 = vmatpush1.bf16.msra.mxu0 %v4379_v52  ;;  %v4450_v51 = vld [vmem:[%s6203_s5 + $0x1a4] ss:$8 sps:$4 sm:$0xff]   ;;  %v4430_v44 = vld [vmem:[%s6203_s5 + $0xa0] ss:$8 sps:$4 sm:$0xff]   ;;  %v2445_v52 = vadd.f32 %v5799_v41, %v1093_v39  ;;  %v4453_v46 = vld [vmem:[%s6203_s5 + $0x194] ss:$8 sps:$4 sm:$0xff]  }
 0x439   :  { %v2739_v58 = vmax.f32 %v2488_v48, 0.0  ;;  %3579 = vmatprep.subr.bf16.mxu0 %v4387_v53  ;;  %v4448_v53 = vld [vmem:[%s6203_s5 + $0x1a0] ss:$8 sps:$4 sm:$0xff]   ;;  %v4436_v41 = vld [vmem:[%s6203_s5 + $0x90] ss:$8 sps:$4 sm:$0xff]  }
 0x43a   :  { %v2486_v47 = vadd.f32 %v5801_v42, %v2445_v52  ;;  %v4444_v48 = vld [vmem:[%s6203_s5 + $0x84] ss:$8 sps:$4 sm:$0xff]   ;;  %v4442_v42 = vld [vmem:[%s6203_s5 + $0x80] ss:$8 sps:$4 sm:$0xff]  }
 0x43b   :  { %v2747_v60 = vpack.c.bf16 %v2739_v58, %v2739_v58  ;;  %3539 = vmatpush1.bf16.msra.mxu1 %v4367_v49  ;;  %v4451_v49 = vld [vmem:[%s6203_s5 + $0x190] ss:$8 sps:$4 sm:$0xff]   ;;  %v4456_v54 = vld [vmem:[%s6203_s5 + $0x184] ss:$8 sps:$4 sm:$0xff]   ;;  %v4507_v58 = vld [vmem:[%s6203_s5 + $0x374] ss:$8 sps:$4 sm:$0xff]  }
 0x43c   :  { %3540 = vmatprep.subr.bf16.mxu1 %v4372_v56  ;;  %3580 = vmatpush1.bf16.msra.mxu0 %v4385_v57  ;;  %v2738_v55 = vmax.f32 %v2486_v47, 0.0  ;;  %v4454_v56 = vld [vmem:[%s6203_s5 + $0x180] ss:$8 sps:$4 sm:$0xff]   ;;  %v4459_v57 = vld [vmem:[%s6203_s5 + $0x274] ss:$8 sps:$4 sm:$0xff]  }
 0x43d   :  { %3566 = vmatprep.mubr.bf16.mxu1 %v2747_v60  ;;  %3581 = vmatprep.subr.bf16.mxu0 %v4393_v59  ;;  %v1101_v59 = vrot.slane %v5785_v35, %v412_v40  ;;  %v4457_v60 = vld [vmem:[%s6203_s5 + $0x270] ss:$8 sps:$4 sm:$0xff]   ;;  %v4478_v39 = vld [vmem:[%s6203_s5 + $0x200] ss:$8 sps:$4 sm:$0xff]   ;;  %v4489_v47 = vld [vmem:[%s6203_s5 + $0x2d4] ss:$8 sps:$4 sm:$0xff]  }
 0x43e   :  { %v4520_v52 = vld [vmem:[%s6203_s5 + $0x320] ss:$8 sps:$4 sm:$0xff]  }
 0x43f   :  { %3541 = vmatpush1.bf16.msra.mxu1 %v4370_v61  ;;  %v2746_v61 = vpack.c.bf16 %v2738_v55, %v2738_v55  ;;  %v4531_v55 = vld [vmem:[%s6203_s5 + $0x3f4] ss:$8 sps:$4 sm:$0xff]  }
 0x440   :  { %3542 = vmatprep.subr.bf16.mxu1 %v4378_v62  ;;  %3582 = vmatpush1.bf16.msra.mxu0 %v4391_v63  ;;  %v4462_v62 = vld [vmem:[%s6203_s5 + $0x264] ss:$8 sps:$4 sm:$0xff]   ;;  %v1105_v63 = vrot.slane %v5785_v35, %v416_v1 }
 0x441   :  { %3583 = vmatprep.subr.bf16.mxu0 %v4399_v0 }
 0x443   :  { %3543 = vmatpush1.bf16.msra.mxu1 %v4376_v4 }
 0x444   :  { %3544 = vmatprep.subr.bf16.mxu1 %v4384_v5  ;;  %3584 = vmatpush1.bf16.msra.mxu0 %v4397_v6  ;;  %v4460_v5 = vld [vmem:[%s6203_s5 + $0x260] ss:$8 sps:$4 sm:$0xff]  }
 0x445   :  { %3585 = vmatprep.subr.bf16.mxu0 %v4405_v7 }
 0x447   :  { %3545 = vmatpush1.bf16.msra.mxu1 %v4382_v8  ;;  %v4465_v8 = vld [vmem:[%s6203_s5 + $0x254] ss:$8 sps:$4 sm:$0xff]  }
 0x448   :  { %3546 = vmatprep.subr.bf16.mxu1 %v4390_v9  ;;  %3586 = vmatpush1.bf16.msra.mxu0 %v4403_v10 }
 0x449   :  { %3587 = vmatprep.subr.bf16.mxu0 %v4411_v11 }
 0x44b   :  { %3547 = vmatpush1.bf16.msra.mxu1 %v4388_v12 }
 0x44c   :  { %3548 = vmatprep.subr.bf16.mxu1 %v4396_v13  ;;  %3588 = vmatpush1.bf16.msra.mxu0 %v4409_v14  ;;  %v4463_v13 = vld [vmem:[%s6203_s5 + $0x250] ss:$8 sps:$4 sm:$0xff]  }
 0x44d   :  { %3589 = vmatprep.subr.bf16.mxu0 %v4417_v15 }
 0x44f   :  { %3549 = vmatpush1.bf16.msra.mxu1 %v4394_v16 }
 0x450   :  { %3550 = vmatprep.subr.bf16.mxu1 %v4402_v17  ;;  %3590 = vmatpush1.bf16.msra.mxu0 %v4415_v18  ;;  %v4468_v17 = vld [vmem:[%s6203_s5 + $0x244] ss:$8 sps:$4 sm:$0xff]  }
 0x451   :  { %3591 = vmatprep.subr.bf16.mxu0 %v4423_v19 }
 0x453   :  { %3551 = vmatpush2.bf16.msra.mxu1 %v4400_v20  ;;  %v4466_v20 = vld [vmem:[%s6203_s5 + $0x240] ss:$8 sps:$4 sm:$0xff]  }
 0x454   :  { %3552 = vmatprep.subr.bf16.mxu1 %v4408_v3  ;;  %3592 = vmatpush2.bf16.msra.mxu0 %v4421_v21  ;;  %v4505_v3 = vld [vmem:[%s6203_s5 + $0x370] ss:$8 sps:$4 sm:$0xff]  }
 0x455   :  { %3593 = vmatprep.subr.bf16.mxu0 %v4429_v23  ;;  %v4471_v23 = vld [vmem:[%s6203_s5 + $0x234] ss:$8 sps:$4 sm:$0xff]  }
 0x457   :  { %3553 = vmatpush2.bf16.msra.mxu1 %v4406_v25  ;;  %v4510_v25 = vld [vmem:[%s6203_s5 + $0x364] ss:$8 sps:$4 sm:$0xff]  }
 0x458   :  { %3554 = vmatprep.subr.bf16.mxu1 %v4414_v26  ;;  %3594 = vmatpush2.bf16.msra.mxu0 %v4427_v27  ;;  %v4469_v26 = vld [vmem:[%s6203_s5 + $0x230] ss:$8 sps:$4 sm:$0xff]   ;;  %v4508_v27 = vld [vmem:[%s6203_s5 + $0x360] ss:$8 sps:$4 sm:$0xff]  }
 0x459   :  { %3595 = vmatprep.subr.bf16.mxu0 %v4435_v28  ;;  %v4474_v28 = vld [vmem:[%s6203_s5 + $0x224] ss:$8 sps:$4 sm:$0xff]  }
 0x45b   :  { %3555 = vmatpush2.bf16.msra.mxu1 %v4412_v29  ;;  %v4513_v29 = vld [vmem:[%s6203_s5 + $0x354] ss:$8 sps:$4 sm:$0xff]  }
 0x45c   :  { %3556 = vmatprep.subr.bf16.mxu1 %v4420_v30  ;;  %3596 = vmatpush2.bf16.msra.mxu0 %v4433_v31  ;;  %v4472_v30 = vld [vmem:[%s6203_s5 + $0x220] ss:$8 sps:$4 sm:$0xff]   ;;  %v4511_v31 = vld [vmem:[%s6203_s5 + $0x350] ss:$8 sps:$4 sm:$0xff]  }
 0x45d   :  { %3597 = vmatprep.subr.bf16.mxu0 %v4441_v32  ;;  %v4477_v32 = vld [vmem:[%s6203_s5 + $0x214] ss:$8 sps:$4 sm:$0xff]  }
 0x45f   :  { %3557 = vmatpush2.bf16.msra.mxu1 %v4418_v33  ;;  %v4516_v33 = vld [vmem:[%s6203_s5 + $0x344] ss:$8 sps:$4 sm:$0xff]  }
 0x460   :  { %3558 = vmatprep.subr.bf16.mxu1 %v4426_v34  ;;  %3598 = vmatpush2.bf16.msra.mxu0 %v4439_v36  ;;  %v4475_v34 = vld [vmem:[%s6203_s5 + $0x210] ss:$8 sps:$4 sm:$0xff]   ;;  %v4514_v36 = vld [vmem:[%s6203_s5 + $0x340] ss:$8 sps:$4 sm:$0xff]  }
 0x461   :  { %3599 = vmatprep.subr.bf16.mxu0 %v4447_v37  ;;  %v4480_v37 = vld [vmem:[%s6203_s5 + $0x204] ss:$8 sps:$4 sm:$0xff]  }
 0x463   :  { %3559 = vmatpush2.bf16.msra.mxu1 %v4424_v38  ;;  %v4519_v38 = vld [vmem:[%s6203_s5 + $0x334] ss:$8 sps:$4 sm:$0xff]  }
 0x464   :  { %3560 = vmatprep.subr.bf16.mxu1 %v4432_v50  ;;  %3600 = vmatpush2.bf16.msra.mxu0 %v4445_v43  ;;  %v4517_v50 = vld [vmem:[%s6203_s5 + $0x330] ss:$8 sps:$4 sm:$0xff]   ;;  %v4483_v43 = vld [vmem:[%s6203_s5 + $0x2f4] ss:$8 sps:$4 sm:$0xff]  }
 0x465   :  { %3601 = vmatprep.subr.bf16.mxu0 %v4450_v51  ;;  %v4522_v51 = vld [vmem:[%s6203_s5 + $0x324] ss:$8 sps:$4 sm:$0xff]  }
 0x467   :  { %3561 = vmatpush2.bf16.msra.mxu1 %v4430_v44  ;;  %v4481_v44 = vld [vmem:[%s6203_s5 + $0x2f0] ss:$8 sps:$4 sm:$0xff]  }
 0x468   :  { %3562 = vmatprep.subr.bf16.mxu1 %v4438_v45  ;;  %3602 = vmatpush2.bf16.msra.mxu0 %v4448_v53  ;;  %v4486_v45 = vld [vmem:[%s6203_s5 + $0x2e4] ss:$8 sps:$4 sm:$0xff]   ;;  %v4525_v53 = vld [vmem:[%s6203_s5 + $0x314] ss:$8 sps:$4 sm:$0xff]  }
 0x469   :  { %3603 = vmatprep.subr.bf16.mxu0 %v4453_v46  ;;  %v4484_v46 = vld [vmem:[%s6203_s5 + $0x2e0] ss:$8 sps:$4 sm:$0xff]  }
 0x46b   :  { %3563 = vmatpush2.bf16.msra.mxu1 %v4436_v41  ;;  %v4523_v41 = vld [vmem:[%s6203_s5 + $0x310] ss:$8 sps:$4 sm:$0xff]  }
 0x46c   :  { %3564 = vmatprep.subr.bf16.mxu1 %v4444_v48  ;;  %3604 = vmatpush2.bf16.msra.mxu0 %v4451_v49  ;;  %v4528_v48 = vld [vmem:[%s6203_s5 + $0x304] ss:$8 sps:$4 sm:$0xff]   ;;  %v4487_v49 = vld [vmem:[%s6203_s5 + $0x2d0] ss:$8 sps:$4 sm:$0xff]  }
 0x46d   :  { %3605 = vmatprep.subr.bf16.mxu0 %v4456_v54  ;;  %v4526_v54 = vld [vmem:[%s6203_s5 + $0x300] ss:$8 sps:$4 sm:$0xff]  }
 0x46f   :  { %3565 = vmatpush2.bf16.msra.mxu1 %v4442_v42  ;;  %v4492_v42 = vld [vmem:[%s6203_s5 + $0x2c4] ss:$8 sps:$4 sm:$0xff]  }
 0x470   :  { %3606 = vmatpush2.bf16.msra.mxu0 %v4454_v56  ;;  %3616 = vmatprep.subr.bf16.mxu1 %v4459_v57  ;;  %v4490_v56 = vld [vmem:[%s6203_s5 + $0x2c0] ss:$8 sps:$4 sm:$0xff]   ;;  %v4529_v57 = vld [vmem:[%s6203_s5 + $0x3f0] ss:$8 sps:$4 sm:$0xff]  }
 0x471   :  { %3657 = vmatprep.subr.bf16.mxu0 %v4507_v58  ;;  %v4495_v58 = vld [vmem:[%s6203_s5 + $0x2b4] ss:$8 sps:$4 sm:$0xff]  }
 0x472   :  { %v2526_v0 = vpop.f32.mrf.mxu1  ;;  %v2567_v4 = vpop.f32.mrf.mxu0  ;;  %3567 = vmatmul.mubr.bf16.vlgmr.msra.gmra.mxu1 %v2746_v61  ;;  %v4532_v61 = vld [vmem:[%s6203_s5 + $0x3e0] ss:$8 sps:$4 sm:$0xff]  }
 0x473   :  { %v2527_v40 = vadd.f32 %v2526_v0, %v1101_v59  ;;  %3617 = vmatpush1.bf16.msra.mxu1 %v4457_v60  ;;  %v4534_v59 = vld [vmem:[%s6203_s5 + $0x3e4] ss:$8 sps:$4 sm:$0xff]   ;;  %v4493_v60 = vld [vmem:[%s6203_s5 + $0x2b0] ss:$8 sps:$4 sm:$0xff]   ;;  %v4496_v0 = vld [vmem:[%s6203_s5 + $0x2a0] ss:$8 sps:$4 sm:$0xff]  }
 0x474   :  { %v2528_v6 = vpop.f32.mrf.mxu1  ;;  %v2569_v7 = vpop.f32.mrf.mxu0  ;;  %3618 = vmatprep.subr.bf16.mxu1 %v4462_v62  ;;  %v4498_v62 = vld [vmem:[%s6203_s5 + $0x2a4] ss:$8 sps:$4 sm:$0xff]  }
 0x475   :  { %v2568_v9 = vadd.f32 %v2567_v4, %v2527_v40  ;;  %v2529_v10 = vadd.f32 %v2528_v6, %v1105_v63  ;;  %v4537_v63 = vld [vmem:[%s6203_s5 + $0x3d4] ss:$8 sps:$4 sm:$0xff]   ;;  %v4535_v4 = vld [vmem:[%s6203_s5 + $0x3d0] ss:$8 sps:$4 sm:$0xff]  }
 0x476   :  { %v2530_v1 = vpop.f32.mrf.mxu1  ;;  %v2571_v11 = vpop.f32.mrf.mxu0  ;;  %v4501_v40 = vld [vmem:[%s6203_s5 + $0x294] ss:$8 sps:$4 sm:$0xff]   ;;  %v4499_v6 = vld [vmem:[%s6203_s5 + $0x290] ss:$8 sps:$4 sm:$0xff]  }
 0x477   :  { %v2570_v12 = vadd.f32 %v2569_v7, %v2529_v10  ;;  %3619 = vmatpush1.bf16.msra.mxu1 %v4460_v5  ;;  %v2740_v14 = vmax.f32 %v2568_v9, 0.0  ;;  %v4540_v5 = vld [vmem:[%s6203_s5 + $0x3c4] ss:$8 sps:$4 sm:$0xff]   ;;  %v4538_v7 = vld [vmem:[%s6203_s5 + $0x3c0] ss:$8 sps:$4 sm:$0xff]   ;;  %v1108_v10 = vsub.s32 4, %v4608_v2 }
 0x478   :  { %v2531_v15 = vpop.f32.mrf.mxu1  ;;  %v2572_v16 = vpop.f32.mrf.mxu0  ;;  %3620 = vmatprep.subr.bf16.mxu1 %v4465_v8  ;;  %v4504_v8 = vld [vmem:[%s6203_s5 + $0x284] ss:$8 sps:$4 sm:$0xff]   ;;  %v4543_v9 = vld [vmem:[%s6203_s5 + $0x3b4] ss:$8 sps:$4 sm:$0xff]   ;;  %v4502_v1 = vld [vmem:[%s6203_s5 + $0x280] ss:$8 sps:$4 sm:$0xff]  }
 0x479   :  { %v2741_v18 = vmax.f32 %v2570_v12, 0.0  ;;  %v2748_v21 = vpack.c.bf16 %v2740_v14, %v2740_v14  ;;  %v4541_v11 = vld [vmem:[%s6203_s5 + $0x3b0] ss:$8 sps:$4 sm:$0xff]   ;;  %v4546_v12 = vld [vmem:[%s6203_s5 + $0x3a4] ss:$8 sps:$4 sm:$0xff]   ;;  %v1109_v14 = vrot.slane %v5785_v35, %v1108_v10 }
 0x47a   :  { %v4544_v15 = vld [vmem:[%s6203_s5 + $0x3a0] ss:$8 sps:$4 sm:$0xff]   ;;  %v4549_v16 = vld [vmem:[%s6203_s5 + $0x394] ss:$8 sps:$4 sm:$0xff]  }
 0x47b   :  { %v2749_v19 = vpack.c.bf16 %v2741_v18, %v2741_v18  ;;  %3621 = vmatpush1.bf16.msra.mxu1 %v4463_v13  ;;  %v1112_v13 = vsub.s32 5, %v4608_v2 }
 0x47c   :  { %3622 = vmatprep.subr.bf16.mxu1 %v4468_v17 }
 0x47d   :  { %3607 = vmatprep.mubr.bf16.mxu0 %v2749_v19  ;;  %v1113_v17 = vrot.slane %v5785_v35, %v1112_v13 }
 0x47e   :  { %3608 = vmatmul.mubr.bf16.vlgmr.msra.gmra.mxu0 %v2748_v21 }
 0x47f   :  { %3623 = vmatpush1.bf16.msra.mxu1 %v4466_v20  ;;  %3658 = vmatpush1.bf16.msra.mxu0 %v4505_v3  ;;  %v4547_v3 = vld [vmem:[%s6203_s5 + $0x390] ss:$8 sps:$4 sm:$0xff]  }
 0x480   :  { %3624 = vmatprep.subr.bf16.mxu1 %v4471_v23  ;;  %3659 = vmatprep.subr.bf16.mxu0 %v4510_v25  ;;  %v4552_v23 = vld [vmem:[%s6203_s5 + $0x384] ss:$8 sps:$4 sm:$0xff]  }
 0x483   :  { %3625 = vmatpush1.bf16.msra.mxu1 %v4469_v26  ;;  %3660 = vmatpush1.bf16.msra.mxu0 %v4508_v27 }
 0x484   :  { %3626 = vmatprep.subr.bf16.mxu1 %v4474_v28  ;;  %3661 = vmatprep.subr.bf16.mxu0 %v4513_v29 }
 0x487   :  { %3627 = vmatpush1.bf16.msra.mxu1 %v4472_v30  ;;  %3662 = vmatpush1.bf16.msra.mxu0 %v4511_v31  ;;  %v4550_v31 = vld [vmem:[%s6203_s5 + $0x380] ss:$8 sps:$4 sm:$0xff]  }
 0x488   :  { %3628 = vmatprep.subr.bf16.mxu1 %v4477_v32  ;;  %3663 = vmatprep.subr.bf16.mxu0 %v4516_v33 }
 0x48b   :  { %3629 = vmatpush1.bf16.msra.mxu1 %v4475_v34  ;;  %3664 = vmatpush1.bf16.msra.mxu0 %v4514_v36 }
 0x48c   :  { %3630 = vmatprep.subr.bf16.mxu1 %v4480_v37  ;;  %3665 = vmatprep.subr.bf16.mxu0 %v4519_v38 }
 0x48f   :  { %3631 = vmatpush1.bf16.msra.mxu1 %v4478_v39  ;;  %3666 = vmatpush1.bf16.msra.mxu0 %v4517_v50  ;;  %v1116_v39 = vsub.s32 6, %v4608_v2  ;;  %v1120_v50 = vsub.s32 7, %v4608_v2 }
 0x490   :  { %3632 = vmatprep.subr.bf16.mxu1 %v4483_v43  ;;  %3667 = vmatprep.subr.bf16.mxu0 %v4522_v51 }
 0x491   :  { %v1117_v43 = vrot.slane %v5785_v35, %v1116_v39  ;;  %v1121_v51 = vrot.slane %v5785_v35, %v1120_v50 }
 0x493   :  { %3633 = vmatpush2.bf16.msra.mxu1 %v4481_v44  ;;  %3668 = vmatpush1.bf16.msra.mxu0 %v4520_v52 }
 0x494   :  { %3634 = vmatprep.subr.bf16.mxu1 %v4486_v45  ;;  %3669 = vmatprep.subr.bf16.mxu0 %v4525_v53 }
 0x497   :  { %3635 = vmatpush2.bf16.msra.mxu1 %v4484_v46  ;;  %3670 = vmatpush1.bf16.msra.mxu0 %v4523_v41 }
 0x498   :  { %3636 = vmatprep.subr.bf16.mxu1 %v4489_v47  ;;  %3671 = vmatprep.subr.bf16.mxu0 %v4528_v48 }
 0x49b   :  { %3637 = vmatpush2.bf16.msra.mxu1 %v4487_v49  ;;  %3672 = vmatpush1.bf16.msra.mxu0 %v4526_v54 }
 0x49c   :  { %3638 = vmatprep.subr.bf16.mxu1 %v4492_v42  ;;  %3673 = vmatprep.subr.bf16.mxu0 %v4531_v55 }
 0x49f   :  { %3639 = vmatpush2.bf16.msra.mxu1 %v4490_v56  ;;  %3674 = vmatpush2.bf16.msra.mxu0 %v4529_v57 }
 0x4a0   :  { %3640 = vmatprep.subr.bf16.mxu1 %v4495_v58  ;;  %3675 = vmatprep.subr.bf16.mxu0 %v4534_v59 }
 0x4a3   :  { %3641 = vmatpush2.bf16.msra.mxu1 %v4493_v60  ;;  %3676 = vmatpush2.bf16.msra.mxu0 %v4532_v61  ;;  %v2882_v60 = vld [vmem:[%s6205_s6] sm:$0x3] }
 0x4a4   :  { %3642 = vmatprep.subr.bf16.mxu1 %v4498_v62  ;;  %3677 = vmatprep.subr.bf16.mxu0 %v4537_v63  ;;  %v2887_v63 = vrot.slane %v2882_v60, %v5171_v22 }
 0x4a7   :  { %3643 = vmatpush2.bf16.msra.mxu1 %v4496_v0  ;;  %3678 = vmatpush2.bf16.msra.mxu0 %v4535_v4  ;;  %v2891_v0 = vrot.slane %v2882_v60, %v5178_v24 }
 0x4a8   :  { %3644 = vmatprep.subr.bf16.mxu1 %v4501_v40  ;;  %3679 = vmatprep.subr.bf16.mxu0 %v4540_v5 }
 0x4ab   :  { %3645 = vmatpush2.bf16.msra.mxu1 %v4499_v6  ;;  %3680 = vmatpush2.bf16.msra.mxu0 %v4538_v7 }
 0x4ac   :  { %3646 = vmatprep.subr.bf16.mxu1 %v4504_v8  ;;  %3681 = vmatprep.subr.bf16.mxu0 %v4543_v9 }
 0x4af   :  { %3647 = vmatpush2.bf16.msra.mxu1 %v4502_v1  ;;  %3682 = vmatpush2.bf16.msra.mxu0 %v4541_v11 }
 0x4b0   :  { %3683 = vmatprep.subr.bf16.mxu0 %v4546_v12 }
 0x4b2   :  { %v2608_v18 = vpop.f32.mrf.mxu1 }
 0x4b3   :  { %v2609_v19 = vadd.f32 %v2608_v18, %v1109_v14  ;;  %v2649_v20 = vpop.f32.mrf.mxu0  ;;  %3684 = vmatpush2.bf16.msra.mxu0 %v4544_v15 }
 0x4b4   :  { %v2610_v21 = vpop.f32.mrf.mxu1  ;;  %3685 = vmatprep.subr.bf16.mxu0 %v4549_v16 }
 0x4b5   :  { %v2650_v25 = vadd.f32 %v2649_v20, %v2609_v19  ;;  %v2611_v26 = vadd.f32 %v2610_v21, %v1113_v17  ;;  %v2651_v27 = vpop.f32.mrf.mxu0 }
 0x4b6   :  { %v2612_v28 = vpop.f32.mrf.mxu1 }
 0x4b7   :  { %v2652_v29 = vadd.f32 %v2651_v27, %v2611_v26  ;;  %v2653_v30 = vpop.f32.mrf.mxu0  ;;  %3686 = vmatpush2.bf16.msra.mxu0 %v4547_v3  ;;  %v2742_v32 = vmax.f32 %v2650_v25, 0.0 }
 0x4b8   :  { %v2613_v33 = vpop.f32.mrf.mxu1  ;;  %3687 = vmatprep.subr.bf16.mxu0 %v4552_v23 }
 0x4b9   :  { %v2743_v34 = vmax.f32 %v2652_v29, 0.0  ;;  %v2654_v36 = vpop.f32.mrf.mxu0  ;;  %v2750_v38 = vpack.c.bf16 %v2742_v32, %v2742_v32 }
 0x4bb   :  { %v2751_v37 = vpack.c.bf16 %v2743_v34, %v2743_v34  ;;  %3688 = vmatpush2.bf16.msra.mxu0 %v4550_v31 }
 0x4bd   :  { %3648 = vmatprep.mubr.bf16.mxu1 %v2751_v37 }
 0x4be   :  { %3649 = vmatmul.mubr.bf16.vlgmr.msra.gmra.mxu1 %v2750_v38 }
 0x4f2   :  { %v2690_v44 = vpop.f32.mrf.mxu1 }
 0x4f3   :  { %v2691_v52 = vadd.f32 %v2690_v44, %v1117_v43  ;;  %v2731_v45 = vpop.f32.mrf.mxu0 }
 0x4f4   :  { %v2692_v53 = vpop.f32.mrf.mxu1 }
 0x4f5   :  { %v2732_v46 = vadd.f32 %v2731_v45, %v2691_v52  ;;  %v2693_v41 = vadd.f32 %v2692_v53, %v1121_v51  ;;  %v2733_v47 = vpop.f32.mrf.mxu0 }
 0x4f6   :  { %v2694_v48 = vpop.f32.mrf.mxu1 }
 0x4f7   :  { %v2734_v49 = vadd.f32 %v2733_v47, %v2693_v41  ;;  %v2735_v54 = vpop.f32.mrf.mxu0  ;;  %v2744_v42 = vmax.f32 %v2732_v46, 0.0 }
 0x4f8   :  { %v2695_v55 = vpop.f32.mrf.mxu1 }
 0x4f9   :  { %v2745_v56 = vmax.f32 %v2734_v49, 0.0  ;;  %v2736_v57 = vpop.f32.mrf.mxu0  ;;  %v2752_v2 = vpack.c.bf16 %v2744_v42, %v2744_v42 }
 0x4fb   :  { %v2753_v58 = vpack.c.bf16 %v2745_v56, %v2745_v56 }
 0x4fd   :  { %3689 = vmatprep.mubr.bf16.mxu0 %v2753_v58 }
 0x4fe   :  { %3690 = vmatmul.mubr.bf16.vlgmr.msra.gmra.mxu0 %v2752_v2 }
 0x532   :  { %v3568_v59 = vpop.f32.mrf.mxu1 }
 0x533   :  { %v3569_v4 = vadd.f32 %v3568_v59, %v2887_v63 }
 0x534   :  { %v3570_v35 = vpop.f32.mrf.mxu1 }
 0x535   :  { %v3571_v5 = vadd.f32 %v3570_v35, %v2891_v0 }
 0x536   :  { %v3572_v61 = vpop.f32.mrf.mxu1 }
 0x538   :  { %v3573_v62 = vpop.f32.mrf.mxu1 }
 0x53e   :  { %v3609_v40 = vpop.f32.mrf.mxu0 }
 0x53f   :  { %v3610_v6 = vadd.f32 %v3609_v40, %v3569_v4 }
 0x540   :  { %v3611_v7 = vpop.f32.mrf.mxu0 }
 0x541   :  { %v3612_v8 = vadd.f32 %v3611_v7, %v3571_v5 }
 0x542   :  { %v3613_v9 = vpop.f32.mrf.mxu0 }
 0x544   :  { %v3614_v10 = vpop.f32.mrf.mxu0 }
 0x57e   :  { %v3650_v1 = vpop.f32.mrf.mxu1 }
 0x57f   :  { %v3651_v14 = vadd.f32 %v3650_v1, %v3610_v6 }
 0x580   :  { %v3652_v11 = vpop.f32.mrf.mxu1 }
 0x581   :  { %v3653_v16 = vadd.f32 %v3652_v11, %v3612_v8 }
 0x582   :  { %v3654_v12 = vpop.f32.mrf.mxu1 }
 0x584   :  { %v3655_v13 = vpop.f32.mrf.mxu1 }
 0x5be   :  { %v3691_v15 = vpop.f32.mrf.mxu0 }
 0x5bf   :  { %v3692_v17 = vadd.f32 %v3691_v15, %v3651_v14 }
 0x5c0   :  { %v3693_v18 = vpop.f32.mrf.mxu0 }
 0x5c1   :  { %v3698_v22 = vsub.f32 0.0, %v3692_v17  ;;  %v3694_v19 = vadd.f32 %v3693_v18, %v3653_v16 }
 0x5c2   :  { %v3695_v24 = vpop.f32.mrf.mxu0 }
 0x5c3   :  { %v3700_v20 = vmul.f32 1.442695, %v3698_v22  ;;  %v3699_v3 = vsub.f32 0.0, %v3694_v19 }
 0x5c4   :  { %v3696_v21 = vpop.f32.mrf.mxu0 }
 0x5c5   :  { %4553 = vpow2.f32 %v3700_v20  ;;  %v3702_v23 = vmul.f32 1.442695, %v3699_v3 }
 0x5c7   :  { %4555 = vpow2.f32 %v3702_v23 }
 0x5d2   :  { %v4554_v25 = vpop.eup %4553 }
 0x5d3   :  { %v3704_v26 = vadd.f32 1.0, %v4554_v25 }
 0x5d4   :  { %v4556_v27 = vpop.eup %4555 }
 0x5d5   :  { %4557 = vrcp.f32 %v3704_v26  ;;  %v3705_v28 = vadd.f32 1.0, %v4556_v27 }
 0x5d7   :  { %4559 = vrcp.f32 %v3705_v28 }
 0x5e2   :  { %v4558_v29 = vpop.eup %4557 }
 0x5e3   :  { %3708 = vst [vmem:[%s6206_s7] sm:$0xff] %v4558_v29 }
 0x5e4   :  { %v4560_v30 = vpop.eup %4559 }
 0x5e5   :  { %3709 = vst [vmem:[%s6206_s7 + $0x8] sm:$0xff] %v4560_v30 }

</bundles_post_ra>
